<compile_context>
chip_gen: v7x
topology: tpu7x:2x2x1
jax: 0.10.0
libtpu: 0.0.40
codegen_flags: <defaults>
</compile_context>

<pallas_src>
import numpy as np
import jax
import jax.numpy as jnp
from jax import lax
from jax.experimental import pallas as pl
from jax.experimental.pallas import tpu as pltpu


# ----------------------------- Pallas kernel -------------------------------

def _lstm_model_kernel(ids_ref, emb_ref,
                       wih0_ref, whh0_ref, b0_ref,
                       wih1_ref, whh1_ref, b1_ref,
                       fcw_ref, fcb_ref,
                       out_ref):
    """Fused embedding + 2-layer LSTM + mean-pool + Linear(H, 2).

    ids_ref:  [T*bs, 1] int32   time-major token ids (row t*bs + b)
    emb_ref:  [Vpad, emb]       embedding table, vocab padded to 128-multiple
    wih*_ref: [in, 4H]          gate-packed input weights  (lanes: i|f|g|o)
    whh*_ref: [H, 4H]           gate-packed recurrent weights
    b*_ref:   [1, 4H]           per-layer (b_ih + b_hh), gate-packed
    fcw_ref:  [H, 2]            pre-transposed fc2 weight;  fcb_ref: [1, 2]
    out_ref:  [bs, 2]
    """
    TB = ids_ref.shape[0]
    bs = out_ref.shape[0]
    T = TB // bs
    H = whh0_ref.shape[0]
    vocab = emb_ref.shape[0]

    # ---- in-kernel embedding gather: one-hot matmul, time-major rows -------
    ids = ids_ref[...]                                             # [TB, 1]
    onehot = (lax.broadcasted_iota(jnp.int32, (TB, vocab), 1) == ids
              ).astype(jnp.float32)                                # [TB, Vpad]
    x = jnp.dot(onehot, emb_ref[...],
                preferred_element_type=jnp.float32)                # [TB, emb]
    # nn.Dropout in eval mode is the identity.

    # ---- hoisted layer-0 input projection: ONE packed matmul + bias add ----
    xw0 = (jnp.dot(x, wih0_ref[...], preferred_element_type=jnp.float32)
           + b0_ref[...])                                          # [TB, 4H]

    # Recurrent / layer-1 weights loaded once, live across the unrolled loop.
    whh0 = whh0_ref[...]
    wih1 = wih1_ref[...]
    whh1 = whh1_ref[...]
    b1 = b1_ref[...]

    def cell(z, c):
        # z: [bs, 4H] packed pre-activation, lane blocks i | f | g | o.
        sg = jax.nn.sigmoid(z)                 # 1 EUP op over all four gates
        i = sg[:, 0 * H:1 * H]
        f = sg[:, 1 * H:2 * H]
        o = sg[:, 3 * H:4 * H]
        g = jnp.tanh(z[:, 2 * H:3 * H])        # tanh only on the g slice
        c_new = f * c + i * g
        h_new = o * jnp.tanh(c_new)
        return h_new, c_new

    zeros = jnp.zeros((bs, H), jnp.float32)
    h0, c0 = zeros, zeros
    h1, c1 = zeros, zeros
    acc = zeros                                 # sum over time of layer-1 h

    # T is a small static trip count: fully unroll (one basic block) so the
    # scheduler overlaps layer-0 step t+1 with layer-1 step t.
    for t in range(T):
        # ------------------------- layer 0, step t -------------------------
        z0 = (xw0[t * bs:(t + 1) * bs, :]
              + jnp.dot(h0, whh0, preferred_element_type=jnp.float32))
        h0, c0 = cell(z0, c0)
        # ------------------------- layer 1, step t -------------------------
        z1 = (jnp.dot(h0, wih1, preferred_element_type=jnp.float32) + b1
              + jnp.dot(h1, whh1, preferred_element_type=jnp.float32))
        h1, c1 = cell(z1, c1)
        acc = acc + h1

    # mean over time == F.avg_pool2d((T, 1)).squeeze(), then Linear(H, 2).
    pooled = acc * (1.0 / T)                                        # [bs, H]
    out_ref[...] = (jnp.dot(pooled, fcw_ref[...],
                            preferred_element_type=jnp.float32)
                    + fcb_ref[...])


# ----------------------------- JAX wrapper ----------------------------------

def pack_params(params):
    """One-time weight packing (call ONCE outside the forward path)."""
    H = params["w_hh_l0"].shape[1]
    emb = jnp.asarray(params["embedding"], jnp.float32)
    vocab = emb.shape[0]
    vpad = ((vocab + 127) // 128) * 128
    emb = jnp.pad(emb, ((0, vpad - vocab), (0, 0)))

    # [4H, in] -> [in, 4H]: PyTorch gate order i,f,g,o preserved along lanes.
    pack = lambda w: jnp.asarray(w, jnp.float32).T
    bias = lambda bi, bh: (jnp.asarray(bi, jnp.float32)
                           + jnp.asarray(bh, jnp.float32)).reshape(1, 4 * H)
    return {
        "emb": emb,
        "wih0": pack(params["w_ih_l0"]), "whh0": pack(params["w_hh_l0"]),
        "b0": bias(params["b_ih_l0"], params["b_hh_l0"]),
        "wih1": pack(params["w_ih_l1"]), "whh1": pack(params["w_hh_l1"]),
        "b1": bias(params["b_ih_l1"], params["b_hh_l1"]),
        "fcw": jnp.asarray(params["fc2_w"], jnp.float32).T,
        "fcb": jnp.asarray(params["fc2_b"], jnp.float32).reshape(1, -1),
    }


def lstm_model_forward(tokens, packed):
    """tokens: [bs, T] int32, packed: pack_params(...) -> logits [bs, 2] f32."""
    bs, T = tokens.shape
    # Time-major flat ids: row t*bs + b holds token (b, t).  (Tiny int reshape;
    # the embedding gather itself happens inside the kernel.)
    ids = jnp.transpose(tokens, (1, 0)).reshape(T * bs, 1).astype(jnp.int32)

    args = (ids, packed["emb"],
            packed["wih0"], packed["whh0"], packed["b0"],
            packed["wih1"], packed["whh1"], packed["b1"],
            packed["fcw"], packed["fcb"])

    return pl.pallas_call(
        _lstm_model_kernel,
        out_shape=jax.ShapeDtypeStruct((bs, 2), jnp.float32),
        in_specs=[pl.BlockSpec(memory_space=pltpu.MemorySpace.VMEM)] * len(args),
        out_specs=pl.BlockSpec(memory_space=pltpu.MemorySpace.VMEM),
    )(*args)


# ------------------------ pure-JAX reference (check) ------------------------

def _ref_lstm_layer(x, w_ih, w_hh, b_ih, b_hh):
    bs, T, _ = x.shape
    H = w_hh.shape[1]

    def step(carry, xt):
        h, c = carry
        gates = (jnp.dot(xt, w_ih.T, precision=lax.Precision.HIGHEST) + b_ih
                 + jnp.dot(h, w_hh.T, precision=lax.Precision.HIGHEST) + b_hh)
        i, f, g, o = jnp.split(gates, 4, axis=-1)
        c = jax.nn.sigmoid(f) * c + jax.nn.sigmoid(i) * jnp.tanh(g)
        h = jax.nn.sigmoid(o) * jnp.tanh(c)
        return (h, c), h

    init = (jnp.zeros((bs, H), jnp.float32), jnp.zeros((bs, H), jnp.float32))
    _, ys = lax.scan(step, init, jnp.transpose(x, (1, 0, 2)))
    return jnp.transpose(ys, (1, 0, 2))                            # [bs, T, H]


def reference_forward(tokens, params):
    x = params["embedding"][tokens].astype(jnp.float32)
    x = _ref_lstm_layer(x, params["w_ih_l0"], params["w_hh_l0"],
                        params["b_ih_l0"], params["b_hh_l0"])
    x = _ref_lstm_layer(x, params["w_ih_l1"], params["w_hh_l1"],
                        params["b_ih_l1"], params["b_hh_l1"])
    pooled = jnp.mean(x, axis=1)                                   # [bs, H]
    return (jnp.dot(pooled, params["fc2_w"].T,
                    precision=lax.Precision.HIGHEST) + params["fc2_b"])


# --------------------------------- main --------------------------------------

def init_params(key, max_words, emb_size, hid_size):
    ks = jax.random.split(key, 12)
    k = 1.0 / np.sqrt(hid_size)
    u = lambda kk, shape: jax.random.uniform(kk, shape, jnp.float32, -k, k)
    return {
        "embedding": jax.random.normal(ks[0], (max_words, emb_size), jnp.float32),
        # layer 0: input emb_size -> hid_size
        "w_ih_l0": u(ks[1], (4 * hid_size, emb_size)),
        "w_hh_l0": u(ks[2], (4 * hid_size, hid_size)),
        "b_ih_l0": u(ks[3], (4 * hid_size,)),
        "b_hh_l0": u(ks[4], (4 * hid_size,)),
        # layer 1: input hid_size -> hid_size
        "w_ih_l1": u(ks[5], (4 * hid_size, hid_size)),
        "w_hh_l1": u(ks[6], (4 * hid_size, hid_size)),
        "b_ih_l1": u(ks[7], (4 * hid_size,)),
        "b_hh_l1": u(ks[8], (4 * hid_size,)),
        # fc2: hid_size -> 2
        "fc2_w": u(ks[9], (2, hid_size)),
        "fc2_b": u(ks[10], (2,)),
    }


if __name__ == "__main__":
    max_words, emb_size, hid_size = 100, 32, 32
    bs, maxlen = 2, 8

    key = jax.random.PRNGKey(0)
    k_param, k_tok = jax.random.split(key)
    params = init_params(k_param, max_words, emb_size, hid_size)
    tokens = jax.random.randint(k_tok, (bs, maxlen), 0, max_words, jnp.int32)

    # Weight packing happens once, outside the jitted forward path.
    packed = pack_params(params)

    out = jax.jit(lstm_model_forward)(tokens, packed)
    out = jax.block_until_ready(out)
    assert out.shape == (bs, 2) and out.dtype == jnp.float32

    ref = jax.block_until_ready(reference_forward(tokens, params))
    assert np.allclose(np.asarray(out), np.asarray(ref), atol=1e-2, rtol=1e-2), (
        f"mismatch: max abs diff {np.max(np.abs(np.asarray(out) - np.asarray(ref)))}")

    print("KERNEL_OK")
</pallas_src>

<mosaic_0001>
module attributes {stable_mosaic.version = 11 : i64} {
  func.func @_lstm_model_kernel(%arg0: memref<16x1xi32, #tpu.memory_space<vmem>>, %arg1: memref<128x32xf32, #tpu.memory_space<vmem>>, %arg2: memref<32x128xf32, #tpu.memory_space<vmem>>, %arg3: memref<32x128xf32, #tpu.memory_space<vmem>>, %arg4: memref<1x128xf32, #tpu.memory_space<vmem>>, %arg5: memref<32x128xf32, #tpu.memory_space<vmem>>, %arg6: memref<32x128xf32, #tpu.memory_space<vmem>>, %arg7: memref<1x128xf32, #tpu.memory_space<vmem>>, %arg8: memref<32x2xf32, #tpu.memory_space<vmem>>, %arg9: memref<1x2xf32, #tpu.memory_space<vmem>>, %arg10: memref<2x2xf32, #tpu.memory_space<vmem>>) attributes {dimension_semantics = [], scalar_prefetch = 0 : i64, scratch_operands = 0 : i64, tpu.core_type = #tpu.core_type<tc>} {
    %c0 = arith.constant 0 : index
    %c0_0 = arith.constant 0 : index
    %0 = vector.load %arg0[%c0, %c0_0] : memref<16x1xi32, #tpu.memory_space<vmem>>, vector<16x1xi32>
    %1 = tpu.iota {dimensions = array<i32: 1>} : vector<16x128xi32>
    %2 = vector.broadcast %0 : vector<16x1xi32> to vector<16x128xi32>
    %3 = arith.cmpi eq, %1, %2 : vector<16x128xi32>
    %4 = arith.extui %3 : vector<16x128xi1> to vector<16x128xi32>
    %5 = arith.sitofp %4 : vector<16x128xi32> to vector<16x128xf32>
    %c0_1 = arith.constant 0 : index
    %c0_2 = arith.constant 0 : index
    %6 = vector.load %arg1[%c0_1, %c0_2] : memref<128x32xf32, #tpu.memory_space<vmem>>, vector<128x32xf32>
    %cst = arith.constant dense<0.000000e+00> : vector<16x32xf32>
    %7 = tpu.matmul %5, %6, %cst {dimension_numbers = #tpu.dot_dimension_numbers<[1], [0], [0], [1], [0, 0, 1, 1], [], []>} : vector<16x128xf32>, vector<128x32xf32>, vector<16x32xf32> -> vector<16x32xf32>
    %c0_3 = arith.constant 0 : index
    %c0_4 = arith.constant 0 : index
    %8 = vector.load %arg2[%c0_3, %c0_4] : memref<32x128xf32, #tpu.memory_space<vmem>>, vector<32x128xf32>
    %cst_5 = arith.constant dense<0.000000e+00> : vector<16x128xf32>
    %9 = tpu.matmul %7, %8, %cst_5 {dimension_numbers = #tpu.dot_dimension_numbers<[1], [0], [0], [1], [0, 0, 1, 1], [], []>} : vector<16x32xf32>, vector<32x128xf32>, vector<16x128xf32> -> vector<16x128xf32>
    %c0_6 = arith.constant 0 : index
    %c0_7 = arith.constant 0 : index
    %10 = vector.load %arg4[%c0_6, %c0_7] : memref<1x128xf32, #tpu.memory_space<vmem>>, vector<1x128xf32>
    %11 = vector.broadcast %10 : vector<1x128xf32> to vector<16x128xf32>
    %12 = arith.addf %9, %11 : vector<16x128xf32>
    %c0_8 = arith.constant 0 : index
    %c0_9 = arith.constant 0 : index
    %13 = vector.load %arg3[%c0_8, %c0_9] : memref<32x128xf32, #tpu.memory_space<vmem>>, vector<32x128xf32>
    %c0_10 = arith.constant 0 : index
    %c0_11 = arith.constant 0 : index
    %14 = vector.load %arg5[%c0_10, %c0_11] : memref<32x128xf32, #tpu.memory_space<vmem>>, vector<32x128xf32>
    %c0_12 = arith.constant 0 : index
    %c0_13 = arith.constant 0 : index
    %15 = vector.load %arg6[%c0_12, %c0_13] : memref<32x128xf32, #tpu.memory_space<vmem>>, vector<32x128xf32>
    %c0_14 = arith.constant 0 : index
    %c0_15 = arith.constant 0 : index
    %16 = vector.load %arg7[%c0_14, %c0_15] : memref<1x128xf32, #tpu.memory_space<vmem>>, vector<1x128xf32>
    %cst_16 = arith.constant 0.000000e+00 : f32
    %17 = vector.broadcast %cst_16 : f32 to vector<2x32xf32>
    %18 = vector.extract_strided_slice %12 {offsets = [0, 0], sizes = [2, 128], strides = [1, 1]} : vector<16x128xf32> to vector<2x128xf32>
    %cst_17 = arith.constant dense<0.000000e+00> : vector<2x128xf32>
    %19 = tpu.matmul %17, %13, %cst_17 {dimension_numbers = #tpu.dot_dimension_numbers<[1], [0], [0], [1], [0, 0, 1, 1], [], []>} : vector<2x32xf32>, vector<32x128xf32>, vector<2x128xf32> -> vector<2x128xf32>
    %20 = arith.addf %18, %19 : vector<2x128xf32>
    %21 = arith.negf %20 : vector<2x128xf32>
    %22 = math.exp %21 : vector<2x128xf32>
    %cst_18 = arith.constant 1.000000e+00 : f32
    %23 = vector.broadcast %cst_18 : f32 to vector<2x128xf32>
    %24 = arith.addf %23, %22 : vector<2x128xf32>
    %25 = arith.divf %23, %24 : vector<2x128xf32>
    %26 = vector.extract_strided_slice %25 {offsets = [0, 0], sizes = [2, 32], strides = [1, 1]} : vector<2x128xf32> to vector<2x32xf32>
    %27 = vector.extract_strided_slice %25 {offsets = [0, 32], sizes = [2, 32], strides = [1, 1]} : vector<2x128xf32> to vector<2x32xf32>
    %28 = vector.extract_strided_slice %25 {offsets = [0, 96], sizes = [2, 32], strides = [1, 1]} : vector<2x128xf32> to vector<2x32xf32>
    %29 = vector.extract_strided_slice %20 {offsets = [0, 64], sizes = [2, 32], strides = [1, 1]} : vector<2x128xf32> to vector<2x32xf32>
    %30 = math.tanh %29 : vector<2x32xf32>
    %31 = arith.mulf %27, %17 : vector<2x32xf32>
    %32 = arith.mulf %26, %30 : vector<2x32xf32>
    %33 = arith.addf %31, %32 : vector<2x32xf32>
    %34 = math.tanh %33 : vector<2x32xf32>
    %35 = arith.mulf %28, %34 : vector<2x32xf32>
    %cst_19 = arith.constant dense<0.000000e+00> : vector<2x128xf32>
    %36 = tpu.matmul %35, %14, %cst_19 {dimension_numbers = #tpu.dot_dimension_numbers<[1], [0], [0], [1], [0, 0, 1, 1], [], []>} : vector<2x32xf32>, vector<32x128xf32>, vector<2x128xf32> -> vector<2x128xf32>
    %37 = vector.broadcast %16 : vector<1x128xf32> to vector<2x128xf32>
    %38 = arith.addf %36, %37 : vector<2x128xf32>
    %cst_20 = arith.constant dense<0.000000e+00> : vector<2x128xf32>
    %39 = tpu.matmul %17, %15, %cst_20 {dimension_numbers = #tpu.dot_dimension_numbers<[1], [0], [0], [1], [0, 0, 1, 1], [], []>} : vector<2x32xf32>, vector<32x128xf32>, vector<2x128xf32> -> vector<2x128xf32>
    %40 = arith.addf %38, %39 : vector<2x128xf32>
    %41 = arith.negf %40 : vector<2x128xf32>
    %42 = math.exp %41 : vector<2x128xf32>
    %cst_21 = arith.constant 1.000000e+00 : f32
    %43 = vector.broadcast %cst_21 : f32 to vector<2x128xf32>
    %44 = arith.addf %43, %42 : vector<2x128xf32>
    %45 = arith.divf %43, %44 : vector<2x128xf32>
    %46 = vector.extract_strided_slice %45 {offsets = [0, 0], sizes = [2, 32], strides = [1, 1]} : vector<2x128xf32> to vector<2x32xf32>
    %47 = vector.extract_strided_slice %45 {offsets = [0, 32], sizes = [2, 32], strides = [1, 1]} : vector<2x128xf32> to vector<2x32xf32>
    %48 = vector.extract_strided_slice %45 {offsets = [0, 96], sizes = [2, 32], strides = [1, 1]} : vector<2x128xf32> to vector<2x32xf32>
    %49 = vector.extract_strided_slice %40 {offsets = [0, 64], sizes = [2, 32], strides = [1, 1]} : vector<2x128xf32> to vector<2x32xf32>
    %50 = math.tanh %49 : vector<2x32xf32>
    %51 = arith.mulf %47, %17 : vector<2x32xf32>
    %52 = arith.mulf %46, %50 : vector<2x32xf32>
    %53 = arith.addf %51, %52 : vector<2x32xf32>
    %54 = math.tanh %53 : vector<2x32xf32>
    %55 = arith.mulf %48, %54 : vector<2x32xf32>
    %56 = arith.addf %17, %55 : vector<2x32xf32>
    %57 = vector.extract_strided_slice %12 {offsets = [2, 0], sizes = [2, 128], strides = [1, 1]} : vector<16x128xf32> to vector<2x128xf32>
    %cst_22 = arith.constant dense<0.000000e+00> : vector<2x128xf32>
    %58 = tpu.matmul %35, %13, %cst_22 {dimension_numbers = #tpu.dot_dimension_numbers<[1], [0], [0], [1], [0, 0, 1, 1], [], []>} : vector<2x32xf32>, vector<32x128xf32>, vector<2x128xf32> -> vector<2x128xf32>
    %59 = arith.addf %57, %58 : vector<2x128xf32>
    %60 = arith.negf %59 : vector<2x128xf32>
    %61 = math.exp %60 : vector<2x128xf32>
    %cst_23 = arith.constant 1.000000e+00 : f32
    %62 = vector.broadcast %cst_23 : f32 to vector<2x128xf32>
    %63 = arith.addf %62, %61 : vector<2x128xf32>
    %64 = arith.divf %62, %63 : vector<2x128xf32>
    %65 = vector.extract_strided_slice %64 {offsets = [0, 0], sizes = [2, 32], strides = [1, 1]} : vector<2x128xf32> to vector<2x32xf32>
    %66 = vector.extract_strided_slice %64 {offsets = [0, 32], sizes = [2, 32], strides = [1, 1]} : vector<2x128xf32> to vector<2x32xf32>
    %67 = vector.extract_strided_slice %64 {offsets = [0, 96], sizes = [2, 32], strides = [1, 1]} : vector<2x128xf32> to vector<2x32xf32>
    %68 = vector.extract_strided_slice %59 {offsets = [0, 64], sizes = [2, 32], strides = [1, 1]} : vector<2x128xf32> to vector<2x32xf32>
    %69 = math.tanh %68 : vector<2x32xf32>
    %70 = arith.mulf %66, %33 : vector<2x32xf32>
    %71 = arith.mulf %65, %69 : vector<2x32xf32>
    %72 = arith.addf %70, %71 : vector<2x32xf32>
    %73 = math.tanh %72 : vector<2x32xf32>
    %74 = arith.mulf %67, %73 : vector<2x32xf32>
    %cst_24 = arith.constant dense<0.000000e+00> : vector<2x128xf32>
    %75 = tpu.matmul %74, %14, %cst_24 {dimension_numbers = #tpu.dot_dimension_numbers<[1], [0], [0], [1], [0, 0, 1, 1], [], []>} : vector<2x32xf32>, vector<32x128xf32>, vector<2x128xf32> -> vector<2x128xf32>
    %76 = vector.broadcast %16 : vector<1x128xf32> to vector<2x128xf32>
    %77 = arith.addf %75, %76 : vector<2x128xf32>
    %cst_25 = arith.constant dense<0.000000e+00> : vector<2x128xf32>
    %78 = tpu.matmul %55, %15, %cst_25 {dimension_numbers = #tpu.dot_dimension_numbers<[1], [0], [0], [1], [0, 0, 1, 1], [], []>} : vector<2x32xf32>, vector<32x128xf32>, vector<2x128xf32> -> vector<2x128xf32>
    %79 = arith.addf %77, %78 : vector<2x128xf32>
    %80 = arith.negf %79 : vector<2x128xf32>
    %81 = math.exp %80 : vector<2x128xf32>
    %cst_26 = arith.constant 1.000000e+00 : f32
    %82 = vector.broadcast %cst_26 : f32 to vector<2x128xf32>
    %83 = arith.addf %82, %81 : vector<2x128xf32>
    %84 = arith.divf %82, %83 : vector<2x128xf32>
    %85 = vector.extract_strided_slice %84 {offsets = [0, 0], sizes = [2, 32], strides = [1, 1]} : vector<2x128xf32> to vector<2x32xf32>
    %86 = vector.extract_strided_slice %84 {offsets = [0, 32], sizes = [2, 32], strides = [1, 1]} : vector<2x128xf32> to vector<2x32xf32>
    %87 = vector.extract_strided_slice %84 {offsets = [0, 96], sizes = [2, 32], strides = [1, 1]} : vector<2x128xf32> to vector<2x32xf32>
    %88 = vector.extract_strided_slice %79 {offsets = [0, 64], sizes = [2, 32], strides = [1, 1]} : vector<2x128xf32> to vector<2x32xf32>
    %89 = math.tanh %88 : vector<2x32xf32>
    %90 = arith.mulf %86, %53 : vector<2x32xf32>
    %91 = arith.mulf %85, %89 : vector<2x32xf32>
    %92 = arith.addf %90, %91 : vector<2x32xf32>
    %93 = math.tanh %92 : vector<2x32xf32>
    %94 = arith.mulf %87, %93 : vector<2x32xf32>
    %95 = arith.addf %56, %94 : vector<2x32xf32>
    %96 = vector.extract_strided_slice %12 {offsets = [4, 0], sizes = [2, 128], strides = [1, 1]} : vector<16x128xf32> to vector<2x128xf32>
    %cst_27 = arith.constant dense<0.000000e+00> : vector<2x128xf32>
    %97 = tpu.matmul %74, %13, %cst_27 {dimension_numbers = #tpu.dot_dimension_numbers<[1], [0], [0], [1], [0, 0, 1, 1], [], []>} : vector<2x32xf32>, vector<32x128xf32>, vector<2x128xf32> -> vector<2x128xf32>
    %98 = arith.addf %96, %97 : vector<2x128xf32>
    %99 = arith.negf %98 : vector<2x128xf32>
    %100 = math.exp %99 : vector<2x128xf32>
    %cst_28 = arith.constant 1.000000e+00 : f32
    %101 = vector.broadcast %cst_28 : f32 to vector<2x128xf32>
    %102 = arith.addf %101, %100 : vector<2x128xf32>
    %103 = arith.divf %101, %102 : vector<2x128xf32>
    %104 = vector.extract_strided_slice %103 {offsets = [0, 0], sizes = [2, 32], strides = [1, 1]} : vector<2x128xf32> to vector<2x32xf32>
    %105 = vector.extract_strided_slice %103 {offsets = [0, 32], sizes = [2, 32], strides = [1, 1]} : vector<2x128xf32> to vector<2x32xf32>
    %106 = vector.extract_strided_slice %103 {offsets = [0, 96], sizes = [2, 32], strides = [1, 1]} : vector<2x128xf32> to vector<2x32xf32>
    %107 = vector.extract_strided_slice %98 {offsets = [0, 64], sizes = [2, 32], strides = [1, 1]} : vector<2x128xf32> to vector<2x32xf32>
    %108 = math.tanh %107 : vector<2x32xf32>
    %109 = arith.mulf %105, %72 : vector<2x32xf32>
    %110 = arith.mulf %104, %108 : vector<2x32xf32>
    %111 = arith.addf %109, %110 : vector<2x32xf32>
    %112 = math.tanh %111 : vector<2x32xf32>
    %113 = arith.mulf %106, %112 : vector<2x32xf32>
    %cst_29 = arith.constant dense<0.000000e+00> : vector<2x128xf32>
    %114 = tpu.matmul %113, %14, %cst_29 {dimension_numbers = #tpu.dot_dimension_numbers<[1], [0], [0], [1], [0, 0, 1, 1], [], []>} : vector<2x32xf32>, vector<32x128xf32>, vector<2x128xf32> -> vector<2x128xf32>
    %115 = vector.broadcast %16 : vector<1x128xf32> to vector<2x128xf32>
    %116 = arith.addf %114, %115 : vector<2x128xf32>
    %cst_30 = arith.constant dense<0.000000e+00> : vector<2x128xf32>
    %117 = tpu.matmul %94, %15, %cst_30 {dimension_numbers = #tpu.dot_dimension_numbers<[1], [0], [0], [1], [0, 0, 1, 1], [], []>} : vector<2x32xf32>, vector<32x128xf32>, vector<2x128xf32> -> vector<2x128xf32>
    %118 = arith.addf %116, %117 : vector<2x128xf32>
    %119 = arith.negf %118 : vector<2x128xf32>
    %120 = math.exp %119 : vector<2x128xf32>
    %cst_31 = arith.constant 1.000000e+00 : f32
    %121 = vector.broadcast %cst_31 : f32 to vector<2x128xf32>
    %122 = arith.addf %121, %120 : vector<2x128xf32>
    %123 = arith.divf %121, %122 : vector<2x128xf32>
    %124 = vector.extract_strided_slice %123 {offsets = [0, 0], sizes = [2, 32], strides = [1, 1]} : vector<2x128xf32> to vector<2x32xf32>
    %125 = vector.extract_strided_slice %123 {offsets = [0, 32], sizes = [2, 32], strides = [1, 1]} : vector<2x128xf32> to vector<2x32xf32>
    %126 = vector.extract_strided_slice %123 {offsets = [0, 96], sizes = [2, 32], strides = [1, 1]} : vector<2x128xf32> to vector<2x32xf32>
    %127 = vector.extract_strided_slice %118 {offsets = [0, 64], sizes = [2, 32], strides = [1, 1]} : vector<2x128xf32> to vector<2x32xf32>
    %128 = math.tanh %127 : vector<2x32xf32>
    %129 = arith.mulf %125, %92 : vector<2x32xf32>
    %130 = arith.mulf %124, %128 : vector<2x32xf32>
    %131 = arith.addf %129, %130 : vector<2x32xf32>
    %132 = math.tanh %131 : vector<2x32xf32>
    %133 = arith.mulf %126, %132 : vector<2x32xf32>
    %134 = arith.addf %95, %133 : vector<2x32xf32>
    %135 = vector.extract_strided_slice %12 {offsets = [6, 0], sizes = [2, 128], strides = [1, 1]} : vector<16x128xf32> to vector<2x128xf32>
    %cst_32 = arith.constant dense<0.000000e+00> : vector<2x128xf32>
    %136 = tpu.matmul %113, %13, %cst_32 {dimension_numbers = #tpu.dot_dimension_numbers<[1], [0], [0], [1], [0, 0, 1, 1], [], []>} : vector<2x32xf32>, vector<32x128xf32>, vector<2x128xf32> -> vector<2x128xf32>
    %137 = arith.addf %135, %136 : vector<2x128xf32>
    %138 = arith.negf %137 : vector<2x128xf32>
    %139 = math.exp %138 : vector<2x128xf32>
    %cst_33 = arith.constant 1.000000e+00 : f32
    %140 = vector.broadcast %cst_33 : f32 to vector<2x128xf32>
    %141 = arith.addf %140, %139 : vector<2x128xf32>
    %142 = arith.divf %140, %141 : vector<2x128xf32>
    %143 = vector.extract_strided_slice %142 {offsets = [0, 0], sizes = [2, 32], strides = [1, 1]} : vector<2x128xf32> to vector<2x32xf32>
    %144 = vector.extract_strided_slice %142 {offsets = [0, 32], sizes = [2, 32], strides = [1, 1]} : vector<2x128xf32> to vector<2x32xf32>
    %145 = vector.extract_strided_slice %142 {offsets = [0, 96], sizes = [2, 32], strides = [1, 1]} : vector<2x128xf32> to vector<2x32xf32>
    %146 = vector.extract_strided_slice %137 {offsets = [0, 64], sizes = [2, 32], strides = [1, 1]} : vector<2x128xf32> to vector<2x32xf32>
    %147 = math.tanh %146 : vector<2x32xf32>
    %148 = arith.mulf %144, %111 : vector<2x32xf32>
    %149 = arith.mulf %143, %147 : vector<2x32xf32>
    %150 = arith.addf %148, %149 : vector<2x32xf32>
    %151 = math.tanh %150 : vector<2x32xf32>
    %152 = arith.mulf %145, %151 : vector<2x32xf32>
    %cst_34 = arith.constant dense<0.000000e+00> : vector<2x128xf32>
    %153 = tpu.matmul %152, %14, %cst_34 {dimension_numbers = #tpu.dot_dimension_numbers<[1], [0], [0], [1], [0, 0, 1, 1], [], []>} : vector<2x32xf32>, vector<32x128xf32>, vector<2x128xf32> -> vector<2x128xf32>
    %154 = vector.broadcast %16 : vector<1x128xf32> to vector<2x128xf32>
    %155 = arith.addf %153, %154 : vector<2x128xf32>
    %cst_35 = arith.constant dense<0.000000e+00> : vector<2x128xf32>
    %156 = tpu.matmul %133, %15, %cst_35 {dimension_numbers = #tpu.dot_dimension_numbers<[1], [0], [0], [1], [0, 0, 1, 1], [], []>} : vector<2x32xf32>, vector<32x128xf32>, vector<2x128xf32> -> vector<2x128xf32>
    %157 = arith.addf %155, %156 : vector<2x128xf32>
    %158 = arith.negf %157 : vector<2x128xf32>
    %159 = math.exp %158 : vector<2x128xf32>
    %cst_36 = arith.constant 1.000000e+00 : f32
    %160 = vector.broadcast %cst_36 : f32 to vector<2x128xf32>
    %161 = arith.addf %160, %159 : vector<2x128xf32>
    %162 = arith.divf %160, %161 : vector<2x128xf32>
    %163 = vector.extract_strided_slice %162 {offsets = [0, 0], sizes = [2, 32], strides = [1, 1]} : vector<2x128xf32> to vector<2x32xf32>
    %164 = vector.extract_strided_slice %162 {offsets = [0, 32], sizes = [2, 32], strides = [1, 1]} : vector<2x128xf32> to vector<2x32xf32>
    %165 = vector.extract_strided_slice %162 {offsets = [0, 96], sizes = [2, 32], strides = [1, 1]} : vector<2x128xf32> to vector<2x32xf32>
    %166 = vector.extract_strided_slice %157 {offsets = [0, 64], sizes = [2, 32], strides = [1, 1]} : vector<2x128xf32> to vector<2x32xf32>
    %167 = math.tanh %166 : vector<2x32xf32>
    %168 = arith.mulf %164, %131 : vector<2x32xf32>
    %169 = arith.mulf %163, %167 : vector<2x32xf32>
    %170 = arith.addf %168, %169 : vector<2x32xf32>
    %171 = math.tanh %170 : vector<2x32xf32>
    %172 = arith.mulf %165, %171 : vector<2x32xf32>
    %173 = arith.addf %134, %172 : vector<2x32xf32>
    %174 = vector.extract_strided_slice %12 {offsets = [8, 0], sizes = [2, 128], strides = [1, 1]} : vector<16x128xf32> to vector<2x128xf32>
    %cst_37 = arith.constant dense<0.000000e+00> : vector<2x128xf32>
    %175 = tpu.matmul %152, %13, %cst_37 {dimension_numbers = #tpu.dot_dimension_numbers<[1], [0], [0], [1], [0, 0, 1, 1], [], []>} : vector<2x32xf32>, vector<32x128xf32>, vector<2x128xf32> -> vector<2x128xf32>
    %176 = arith.addf %174, %175 : vector<2x128xf32>
    %177 = arith.negf %176 : vector<2x128xf32>
    %178 = math.exp %177 : vector<2x128xf32>
    %cst_38 = arith.constant 1.000000e+00 : f32
    %179 = vector.broadcast %cst_38 : f32 to vector<2x128xf32>
    %180 = arith.addf %179, %178 : vector<2x128xf32>
    %181 = arith.divf %179, %180 : vector<2x128xf32>
    %182 = vector.extract_strided_slice %181 {offsets = [0, 0], sizes = [2, 32], strides = [1, 1]} : vector<2x128xf32> to vector<2x32xf32>
    %183 = vector.extract_strided_slice %181 {offsets = [0, 32], sizes = [2, 32], strides = [1, 1]} : vector<2x128xf32> to vector<2x32xf32>
    %184 = vector.extract_strided_slice %181 {offsets = [0, 96], sizes = [2, 32], strides = [1, 1]} : vector<2x128xf32> to vector<2x32xf32>
    %185 = vector.extract_strided_slice %176 {offsets = [0, 64], sizes = [2, 32], strides = [1, 1]} : vector<2x128xf32> to vector<2x32xf32>
    %186 = math.tanh %185 : vector<2x32xf32>
    %187 = arith.mulf %183, %150 : vector<2x32xf32>
    %188 = arith.mulf %182, %186 : vector<2x32xf32>
    %189 = arith.addf %187, %188 : vector<2x32xf32>
    %190 = math.tanh %189 : vector<2x32xf32>
    %191 = arith.mulf %184, %190 : vector<2x32xf32>
    %cst_39 = arith.constant dense<0.000000e+00> : vector<2x128xf32>
    %192 = tpu.matmul %191, %14, %cst_39 {dimension_numbers = #tpu.dot_dimension_numbers<[1], [0], [0], [1], [0, 0, 1, 1], [], []>} : vector<2x32xf32>, vector<32x128xf32>, vector<2x128xf32> -> vector<2x128xf32>
    %193 = vector.broadcast %16 : vector<1x128xf32> to vector<2x128xf32>
    %194 = arith.addf %192, %193 : vector<2x128xf32>
    %cst_40 = arith.constant dense<0.000000e+00> : vector<2x128xf32>
    %195 = tpu.matmul %172, %15, %cst_40 {dimension_numbers = #tpu.dot_dimension_numbers<[1], [0], [0], [1], [0, 0, 1, 1], [], []>} : vector<2x32xf32>, vector<32x128xf32>, vector<2x128xf32> -> vector<2x128xf32>
    %196 = arith.addf %194, %195 : vector<2x128xf32>
    %197 = arith.negf %196 : vector<2x128xf32>
    %198 = math.exp %197 : vector<2x128xf32>
    %cst_41 = arith.constant 1.000000e+00 : f32
    %199 = vector.broadcast %cst_41 : f32 to vector<2x128xf32>
    %200 = arith.addf %199, %198 : vector<2x128xf32>
    %201 = arith.divf %199, %200 : vector<2x128xf32>
    %202 = vector.extract_strided_slice %201 {offsets = [0, 0], sizes = [2, 32], strides = [1, 1]} : vector<2x128xf32> to vector<2x32xf32>
    %203 = vector.extract_strided_slice %201 {offsets = [0, 32], sizes = [2, 32], strides = [1, 1]} : vector<2x128xf32> to vector<2x32xf32>
    %204 = vector.extract_strided_slice %201 {offsets = [0, 96], sizes = [2, 32], strides = [1, 1]} : vector<2x128xf32> to vector<2x32xf32>
    %205 = vector.extract_strided_slice %196 {offsets = [0, 64], sizes = [2, 32], strides = [1, 1]} : vector<2x128xf32> to vector<2x32xf32>
    %206 = math.tanh %205 : vector<2x32xf32>
    %207 = arith.mulf %203, %170 : vector<2x32xf32>
    %208 = arith.mulf %202, %206 : vector<2x32xf32>
    %209 = arith.addf %207, %208 : vector<2x32xf32>
    %210 = math.tanh %209 : vector<2x32xf32>
    %211 = arith.mulf %204, %210 : vector<2x32xf32>
    %212 = arith.addf %173, %211 : vector<2x32xf32>
    %213 = vector.extract_strided_slice %12 {offsets = [10, 0], sizes = [2, 128], strides = [1, 1]} : vector<16x128xf32> to vector<2x128xf32>
    %cst_42 = arith.constant dense<0.000000e+00> : vector<2x128xf32>
    %214 = tpu.matmul %191, %13, %cst_42 {dimension_numbers = #tpu.dot_dimension_numbers<[1], [0], [0], [1], [0, 0, 1, 1], [], []>} : vector<2x32xf32>, vector<32x128xf32>, vector<2x128xf32> -> vector<2x128xf32>
    %215 = arith.addf %213, %214 : vector<2x128xf32>
    %216 = arith.negf %215 : vector<2x128xf32>
    %217 = math.exp %216 : vector<2x128xf32>
    %cst_43 = arith.constant 1.000000e+00 : f32
    %218 = vector.broadcast %cst_43 : f32 to vector<2x128xf32>
    %219 = arith.addf %218, %217 : vector<2x128xf32>
    %220 = arith.divf %218, %219 : vector<2x128xf32>
    %221 = vector.extract_strided_slice %220 {offsets = [0, 0], sizes = [2, 32], strides = [1, 1]} : vector<2x128xf32> to vector<2x32xf32>
    %222 = vector.extract_strided_slice %220 {offsets = [0, 32], sizes = [2, 32], strides = [1, 1]} : vector<2x128xf32> to vector<2x32xf32>
    %223 = vector.extract_strided_slice %220 {offsets = [0, 96], sizes = [2, 32], strides = [1, 1]} : vector<2x128xf32> to vector<2x32xf32>
    %224 = vector.extract_strided_slice %215 {offsets = [0, 64], sizes = [2, 32], strides = [1, 1]} : vector<2x128xf32> to vector<2x32xf32>
    %225 = math.tanh %224 : vector<2x32xf32>
    %226 = arith.mulf %222, %189 : vector<2x32xf32>
    %227 = arith.mulf %221, %225 : vector<2x32xf32>
    %228 = arith.addf %226, %227 : vector<2x32xf32>
    %229 = math.tanh %228 : vector<2x32xf32>
    %230 = arith.mulf %223, %229 : vector<2x32xf32>
    %cst_44 = arith.constant dense<0.000000e+00> : vector<2x128xf32>
    %231 = tpu.matmul %230, %14, %cst_44 {dimension_numbers = #tpu.dot_dimension_numbers<[1], [0], [0], [1], [0, 0, 1, 1], [], []>} : vector<2x32xf32>, vector<32x128xf32>, vector<2x128xf32> -> vector<2x128xf32>
    %232 = vector.broadcast %16 : vector<1x128xf32> to vector<2x128xf32>
    %233 = arith.addf %231, %232 : vector<2x128xf32>
    %cst_45 = arith.constant dense<0.000000e+00> : vector<2x128xf32>
    %234 = tpu.matmul %211, %15, %cst_45 {dimension_numbers = #tpu.dot_dimension_numbers<[1], [0], [0], [1], [0, 0, 1, 1], [], []>} : vector<2x32xf32>, vector<32x128xf32>, vector<2x128xf32> -> vector<2x128xf32>
    %235 = arith.addf %233, %234 : vector<2x128xf32>
    %236 = arith.negf %235 : vector<2x128xf32>
    %237 = math.exp %236 : vector<2x128xf32>
    %cst_46 = arith.constant 1.000000e+00 : f32
    %238 = vector.broadcast %cst_46 : f32 to vector<2x128xf32>
    %239 = arith.addf %238, %237 : vector<2x128xf32>
    %240 = arith.divf %238, %239 : vector<2x128xf32>
    %241 = vector.extract_strided_slice %240 {offsets = [0, 0], sizes = [2, 32], strides = [1, 1]} : vector<2x128xf32> to vector<2x32xf32>
    %242 = vector.extract_strided_slice %240 {offsets = [0, 32], sizes = [2, 32], strides = [1, 1]} : vector<2x128xf32> to vector<2x32xf32>
    %243 = vector.extract_strided_slice %240 {offsets = [0, 96], sizes = [2, 32], strides = [1, 1]} : vector<2x128xf32> to vector<2x32xf32>
    %244 = vector.extract_strided_slice %235 {offsets = [0, 64], sizes = [2, 32], strides = [1, 1]} : vector<2x128xf32> to vector<2x32xf32>
    %245 = math.tanh %244 : vector<2x32xf32>
    %246 = arith.mulf %242, %209 : vector<2x32xf32>
    %247 = arith.mulf %241, %245 : vector<2x32xf32>
    %248 = arith.addf %246, %247 : vector<2x32xf32>
    %249 = math.tanh %248 : vector<2x32xf32>
    %250 = arith.mulf %243, %249 : vector<2x32xf32>
    %251 = arith.addf %212, %250 : vector<2x32xf32>
    %252 = vector.extract_strided_slice %12 {offsets = [12, 0], sizes = [2, 128], strides = [1, 1]} : vector<16x128xf32> to vector<2x128xf32>
    %cst_47 = arith.constant dense<0.000000e+00> : vector<2x128xf32>
    %253 = tpu.matmul %230, %13, %cst_47 {dimension_numbers = #tpu.dot_dimension_numbers<[1], [0], [0], [1], [0, 0, 1, 1], [], []>} : vector<2x32xf32>, vector<32x128xf32>, vector<2x128xf32> -> vector<2x128xf32>
    %254 = arith.addf %252, %253 : vector<2x128xf32>
    %255 = arith.negf %254 : vector<2x128xf32>
    %256 = math.exp %255 : vector<2x128xf32>
    %cst_48 = arith.constant 1.000000e+00 : f32
    %257 = vector.broadcast %cst_48 : f32 to vector<2x128xf32>
    %258 = arith.addf %257, %256 : vector<2x128xf32>
    %259 = arith.divf %257, %258 : vector<2x128xf32>
    %260 = vector.extract_strided_slice %259 {offsets = [0, 0], sizes = [2, 32], strides = [1, 1]} : vector<2x128xf32> to vector<2x32xf32>
    %261 = vector.extract_strided_slice %259 {offsets = [0, 32], sizes = [2, 32], strides = [1, 1]} : vector<2x128xf32> to vector<2x32xf32>
    %262 = vector.extract_strided_slice %259 {offsets = [0, 96], sizes = [2, 32], strides = [1, 1]} : vector<2x128xf32> to vector<2x32xf32>
    %263 = vector.extract_strided_slice %254 {offsets = [0, 64], sizes = [2, 32], strides = [1, 1]} : vector<2x128xf32> to vector<2x32xf32>
    %264 = math.tanh %263 : vector<2x32xf32>
    %265 = arith.mulf %261, %228 : vector<2x32xf32>
    %266 = arith.mulf %260, %264 : vector<2x32xf32>
    %267 = arith.addf %265, %266 : vector<2x32xf32>
    %268 = math.tanh %267 : vector<2x32xf32>
    %269 = arith.mulf %262, %268 : vector<2x32xf32>
    %cst_49 = arith.constant dense<0.000000e+00> : vector<2x128xf32>
    %270 = tpu.matmul %269, %14, %cst_49 {dimension_numbers = #tpu.dot_dimension_numbers<[1], [0], [0], [1], [0, 0, 1, 1], [], []>} : vector<2x32xf32>, vector<32x128xf32>, vector<2x128xf32> -> vector<2x128xf32>
    %271 = vector.broadcast %16 : vector<1x128xf32> to vector<2x128xf32>
    %272 = arith.addf %270, %271 : vector<2x128xf32>
    %cst_50 = arith.constant dense<0.000000e+00> : vector<2x128xf32>
    %273 = tpu.matmul %250, %15, %cst_50 {dimension_numbers = #tpu.dot_dimension_numbers<[1], [0], [0], [1], [0, 0, 1, 1], [], []>} : vector<2x32xf32>, vector<32x128xf32>, vector<2x128xf32> -> vector<2x128xf32>
    %274 = arith.addf %272, %273 : vector<2x128xf32>
    %275 = arith.negf %274 : vector<2x128xf32>
    %276 = math.exp %275 : vector<2x128xf32>
    %cst_51 = arith.constant 1.000000e+00 : f32
    %277 = vector.broadcast %cst_51 : f32 to vector<2x128xf32>
    %278 = arith.addf %277, %276 : vector<2x128xf32>
    %279 = arith.divf %277, %278 : vector<2x128xf32>
    %280 = vector.extract_strided_slice %279 {offsets = [0, 0], sizes = [2, 32], strides = [1, 1]} : vector<2x128xf32> to vector<2x32xf32>
    %281 = vector.extract_strided_slice %279 {offsets = [0, 32], sizes = [2, 32], strides = [1, 1]} : vector<2x128xf32> to vector<2x32xf32>
    %282 = vector.extract_strided_slice %279 {offsets = [0, 96], sizes = [2, 32], strides = [1, 1]} : vector<2x128xf32> to vector<2x32xf32>
    %283 = vector.extract_strided_slice %274 {offsets = [0, 64], sizes = [2, 32], strides = [1, 1]} : vector<2x128xf32> to vector<2x32xf32>
    %284 = math.tanh %283 : vector<2x32xf32>
    %285 = arith.mulf %281, %248 : vector<2x32xf32>
    %286 = arith.mulf %280, %284 : vector<2x32xf32>
    %287 = arith.addf %285, %286 : vector<2x32xf32>
    %288 = math.tanh %287 : vector<2x32xf32>
    %289 = arith.mulf %282, %288 : vector<2x32xf32>
    %290 = arith.addf %251, %289 : vector<2x32xf32>
    %291 = vector.extract_strided_slice %12 {offsets = [14, 0], sizes = [2, 128], strides = [1, 1]} : vector<16x128xf32> to vector<2x128xf32>
    %cst_52 = arith.constant dense<0.000000e+00> : vector<2x128xf32>
    %292 = tpu.matmul %269, %13, %cst_52 {dimension_numbers = #tpu.dot_dimension_numbers<[1], [0], [0], [1], [0, 0, 1, 1], [], []>} : vector<2x32xf32>, vector<32x128xf32>, vector<2x128xf32> -> vector<2x128xf32>
    %293 = arith.addf %291, %292 : vector<2x128xf32>
    %294 = arith.negf %293 : vector<2x128xf32>
    %295 = math.exp %294 : vector<2x128xf32>
    %cst_53 = arith.constant 1.000000e+00 : f32
    %296 = vector.broadcast %cst_53 : f32 to vector<2x128xf32>
    %297 = arith.addf %296, %295 : vector<2x128xf32>
    %298 = arith.divf %296, %297 : vector<2x128xf32>
    %299 = vector.extract_strided_slice %298 {offsets = [0, 0], sizes = [2, 32], strides = [1, 1]} : vector<2x128xf32> to vector<2x32xf32>
    %300 = vector.extract_strided_slice %298 {offsets = [0, 32], sizes = [2, 32], strides = [1, 1]} : vector<2x128xf32> to vector<2x32xf32>
    %301 = vector.extract_strided_slice %298 {offsets = [0, 96], sizes = [2, 32], strides = [1, 1]} : vector<2x128xf32> to vector<2x32xf32>
    %302 = vector.extract_strided_slice %293 {offsets = [0, 64], sizes = [2, 32], strides = [1, 1]} : vector<2x128xf32> to vector<2x32xf32>
    %303 = math.tanh %302 : vector<2x32xf32>
    %304 = arith.mulf %300, %267 : vector<2x32xf32>
    %305 = arith.mulf %299, %303 : vector<2x32xf32>
    %306 = arith.addf %304, %305 : vector<2x32xf32>
    %307 = math.tanh %306 : vector<2x32xf32>
    %308 = arith.mulf %301, %307 : vector<2x32xf32>
    %cst_54 = arith.constant dense<0.000000e+00> : vector<2x128xf32>
    %309 = tpu.matmul %308, %14, %cst_54 {dimension_numbers = #tpu.dot_dimension_numbers<[1], [0], [0], [1], [0, 0, 1, 1], [], []>} : vector<2x32xf32>, vector<32x128xf32>, vector<2x128xf32> -> vector<2x128xf32>
    %310 = vector.broadcast %16 : vector<1x128xf32> to vector<2x128xf32>
    %311 = arith.addf %309, %310 : vector<2x128xf32>
    %cst_55 = arith.constant dense<0.000000e+00> : vector<2x128xf32>
    %312 = tpu.matmul %289, %15, %cst_55 {dimension_numbers = #tpu.dot_dimension_numbers<[1], [0], [0], [1], [0, 0, 1, 1], [], []>} : vector<2x32xf32>, vector<32x128xf32>, vector<2x128xf32> -> vector<2x128xf32>
    %313 = arith.addf %311, %312 : vector<2x128xf32>
    %314 = arith.negf %313 : vector<2x128xf32>
    %315 = math.exp %314 : vector<2x128xf32>
    %cst_56 = arith.constant 1.000000e+00 : f32
    %316 = vector.broadcast %cst_56 : f32 to vector<2x128xf32>
    %317 = arith.addf %316, %315 : vector<2x128xf32>
    %318 = arith.divf %316, %317 : vector<2x128xf32>
    %319 = vector.extract_strided_slice %318 {offsets = [0, 0], sizes = [2, 32], strides = [1, 1]} : vector<2x128xf32> to vector<2x32xf32>
    %320 = vector.extract_strided_slice %318 {offsets = [0, 32], sizes = [2, 32], strides = [1, 1]} : vector<2x128xf32> to vector<2x32xf32>
    %321 = vector.extract_strided_slice %318 {offsets = [0, 96], sizes = [2, 32], strides = [1, 1]} : vector<2x128xf32> to vector<2x32xf32>
    %322 = vector.extract_strided_slice %313 {offsets = [0, 64], sizes = [2, 32], strides = [1, 1]} : vector<2x128xf32> to vector<2x32xf32>
    %323 = math.tanh %322 : vector<2x32xf32>
    %324 = arith.mulf %320, %287 : vector<2x32xf32>
    %325 = arith.mulf %319, %323 : vector<2x32xf32>
    %326 = arith.addf %324, %325 : vector<2x32xf32>
    %327 = math.tanh %326 : vector<2x32xf32>
    %328 = arith.mulf %321, %327 : vector<2x32xf32>
    %329 = arith.addf %290, %328 : vector<2x32xf32>
    %cst_57 = arith.constant 1.250000e-01 : f32
    %330 = vector.broadcast %cst_57 : f32 to vector<2x32xf32>
    %331 = arith.mulf %329, %330 : vector<2x32xf32>
    %c0_58 = arith.constant 0 : index
    %c0_59 = arith.constant 0 : index
    %332 = vector.load %arg8[%c0_58, %c0_59] : memref<32x2xf32, #tpu.memory_space<vmem>>, vector<32x2xf32>
    %cst_60 = arith.constant dense<0.000000e+00> : vector<2x2xf32>
    %333 = tpu.matmul %331, %332, %cst_60 {dimension_numbers = #tpu.dot_dimension_numbers<[1], [0], [0], [1], [0, 0, 1, 1], [], []>} : vector<2x32xf32>, vector<32x2xf32>, vector<2x2xf32> -> vector<2x2xf32>
    %c0_61 = arith.constant 0 : index
    %c0_62 = arith.constant 0 : index
    %334 = vector.load %arg9[%c0_61, %c0_62] : memref<1x2xf32, #tpu.memory_space<vmem>>, vector<1x2xf32>
    %335 = vector.broadcast %334 : vector<1x2xf32> to vector<2x2xf32>
    %336 = arith.addf %333, %335 : vector<2x2xf32>
    %c0_63 = arith.constant 0 : index
    %c0_64 = arith.constant 0 : index
    %337 = vector.load %arg10[%c0_63, %c0_64] : memref<2x2xf32, #tpu.memory_space<vmem>>, vector<2x2xf32>
    tpu.vector_store %arg10[%c0_63, %c0_64], %336 {strides = array<i32>} : memref<2x2xf32, #tpu.memory_space<vmem>>, vector<2x2xf32>,
    return
  }
}

</mosaic_0001>

<bundles_post_ra>
// kernel: lstm_model_forward.1
= control target key start
LH: loop header
LB: loop body
LE: loop exit
PB: predicated region body
PF: predicated region fallthrough
CT: control target
= control target key end

     0   :  { %v3462_v2 = vmov 0   ;;  %s4005_s0 = inlined_call_operand.vmem [shape: s32[16,1], index: 0, kind: input, shape index: {}]   ;;  %s4006_s1 = inlined_call_operand.vmem [shape: f32[128,32], index: 1, kind: input, shape index: {}]   ;;  %s4007_s2 = inlined_call_operand.vmem [shape: f32[32,128], index: 2, kind: input, shape index: {}]   ;;  %s4008_s3 = inlined_call_operand.vmem [shape: f32[32,128], index: 3, kind: input, shape index: {}]   ;;  %s4009_s4 = inlined_call_operand.vmem [shape: f32[1,128], index: 4, kind: input, shape index: {}]   ;;  %s4010_s5 = inlined_call_operand.vmem [shape: f32[32,128], index: 5, kind: input, shape index: {}]   ;;  %s4011_s6 = inlined_call_operand.vmem [shape: f32[32,128], index: 6, kind: input, shape index: {}]   ;;  %s4012_s7 = inlined_call_operand.vmem [shape: f32[1,128], index: 7, kind: input, shape index: {}]   ;;  %s4013_s8 = inlined_call_operand.vmem [shape: f32[32,2], index: 8, kind: input, shape index: {}]   ;;  %s4014_s9 = inlined_call_operand.vmem [shape: f32[1,2], index: 9, kind: input, shape index: {}]   ;;  %s4015_s10 = inlined_call_operand.hbm [shape: f32[2,2], index: 10, kind: output, shape index: {}]  }
   0x1   :  { %v36_v0 = vld [vmem:[%s4005_s0] sm:$0xff]  ;;  %3309 = vset.pattern.permute.xlu0 %v3462_v2  ;;  %v53_v3 = vld [vmem:[%s4006_s1 + $0x8] sm:$0xff]  ;;  %v54_v4 = vld [vmem:[%s4006_s1 + $0x10] sm:$0xff] }
   0x2   :  { %v52_v1 = vld [vmem:[%s4006_s1] sm:$0xff]  ;;  %v55_v5 = vld [vmem:[%s4006_s1 + $0x18] sm:$0xff]  ;;  %41 = vperm.xlu0 %3309, %v36_v0   ;;  %v37_v8 = vld [vmem:[%s4005_s0 + $0x8] sm:$0xff] }
   0x3   :  { %v3087_v6 = vpack.c.bf16 %v53_v3, %v52_v1  ;;  %v3091_v7 = vpack.c.bf16 %v55_v5, %v54_v4  ;;  %v56_v9 = vld [vmem:[%s4006_s1 + $0x20] sm:$0xff]  ;;  %v57_v10 = vld [vmem:[%s4006_s1 + $0x28] sm:$0xff]  ;;  %v58_v12 = vld [vmem:[%s4006_s1 + $0x30] sm:$0xff] }
   0x4   :  { %v3095_v11 = vpack.c.bf16 %v57_v10, %v56_v9  ;;  %v59_v13 = vld [vmem:[%s4006_s1 + $0x38] sm:$0xff] }
   0x5   :  { %3088 = vmatprep.subr.bf16.mxu0 %v3087_v6 }
   0x6   :  { %3090 = vmatpush3.bf16.msra.mxu0 %v3087_v6  ;;  %44 = vperm.xlu0 %3309, %v37_v8  }
   0x7   :  { %3092 = vmatprep.subr.bf16.mxu0 %v3091_v7 }
   0x8   :  { %15 = vsyncpa [#allocation3], 0  ;;  %v143_v14 = vld [vmem:[%s4007_s2] sm:$0xff]  ;;  %v144_v15 = vld [vmem:[%s4007_s2 + $0x8] sm:$0xff]  ;;  %v3099_v20 = vpack.c.bf16 %v59_v13, %v58_v12  ;;  %v38_v33 = vlaneseq  ;;  %v3463_v36 = vmov 1.0   ;;  %v3464_v41 = vmov 0.0|0.0  }
   0x9   :  { %v145_v16 = vld [vmem:[%s4007_s2 + $0x10] sm:$0xff]  ;;  %v3119_v17 = vpack.c.bf16 %v144_v15, %v143_v14  ;;  %v146_v18 = vld [vmem:[%s4007_s2 + $0x18] sm:$0xff]  ;;  %v60_v21 = vld [vmem:[%s4006_s1 + $0x40] sm:$0xff]  ;;  %vm3465_vm2 = vmmov 0   ;;  %v3466_v45 = vmov 0.0   ;;  %vm154_vm3 = vcmask 261120  }
   0xa   :  { %3094 = vmatpush3.bf16.msra.mxu0 %v3091_v7  ;;  %v3123_v19 = vpack.c.bf16 %v146_v18, %v145_v16  ;;  %v61_v22 = vld [vmem:[%s4006_s1 + $0x48] sm:$0xff]  ;;  %v62_v24 = vld [vmem:[%s4006_s1 + $0x50] sm:$0xff]  ;;  %v63_v25 = vld [vmem:[%s4006_s1 + $0x58] sm:$0xff]  ;;  %v39_v34 = vand.u32 127, %v38_v33  ;;  %s3467_s22 = smov 64   ;;  %vm2553_vm4 = vcmask 9216  }
   0xb   :  { %3096 = vmatprep.subr.bf16.mxu0 %v3095_v11  ;;  %3120 = vmatprep.subr.bf16.mxu1 %v3119_v17  ;;  %v3103_v23 = vpack.c.bf16 %v61_v22, %v60_v21  ;;  %v3107_v26 = vpack.c.bf16 %v63_v25, %v62_v24  ;;  %v64_v27 = vld [vmem:[%s4006_s1 + $0x60] sm:$0xff]  ;;  %v65_v28 = vld [vmem:[%s4006_s1 + $0x68] sm:$0xff]  ;;  %v66_v30 = vld [vmem:[%s4006_s1 + $0x70] sm:$0xff] }
   0xc   :  { %3122 = vmatpush3.bf16.msra.mxu1 %v3119_v17  ;;  %v3111_v29 = vpack.c.bf16 %v65_v28, %v64_v27  ;;  %v67_v31 = vld [vmem:[%s4006_s1 + $0x78] sm:$0xff]  ;;  %v236_v38 = vld [vmem:[%s4008_s3] sm:$0xff]  ;;  %v237_v39 = vld [vmem:[%s4008_s3 + $0x8] sm:$0xff] }
   0xd   :  { %3124 = vmatprep.subr.bf16.mxu1 %v3123_v19  ;;  %v3115_v32 = vpack.c.bf16 %v67_v31, %v66_v30  ;;  %v3597_v40 = vpack.c.bf16 %v237_v39, %v236_v38  ;;  %v238_v42 = vld [vmem:[%s4008_s3 + $0x10] sm:$0xff]  ;;  %v239_v43 = vld [vmem:[%s4008_s3 + $0x18] sm:$0xff]  ;;  %v2573_v48 = vld [vmem:[%s4009_s4] ss:$0 sm:$0xff]  ;;  %s3468_s4 = smov 32  }
   0xe   :  { %3098 = vmatpush3.bf16.msra.mxu0 %v3095_v11  ;;  %v3609_v44 = vpack.c.bf16 %v239_v43, %v238_v42  ;;  %v240_v2 = vld [vmem:[%s4010_s5] sm:$0xff]  ;;  %v241_v3 = vld [vmem:[%s4010_s5 + $0x8] sm:$0xff]  ;;  %v242_v4 = vld [vmem:[%s4010_s5 + $0x10] sm:$0xff] }
   0xf   :  { %3100 = vmatprep.subr.bf16.mxu0 %v3099_v20  ;;  %v3648_v5 = vpack.c.bf16 %v241_v3, %v240_v2  ;;  %v243_v6 = vld [vmem:[%s4010_s5 + $0x18] sm:$0xff]  ;;  %v244_v11 = vld [vmem:[%s4011_s6] sm:$0xff]  ;;  %v245_v12 = vld [vmem:[%s4011_s6 + $0x8] sm:$0xff] }
  0x10   :  { %3126 = vmatpush3.bf16.msra.mxu1 %v3123_v19  ;;  %v3654_v7 = vpack.c.bf16 %v243_v6, %v242_v4  ;;  %v3667_v13 = vpack.c.bf16 %v245_v12, %v244_v11  ;;  %v246_v14 = vld [vmem:[%s4011_s6 + $0x10] sm:$0xff]  ;;  %v247_v15 = vld [vmem:[%s4011_s6 + $0x18] sm:$0xff]  ;;  %v3702_v22 = vld [vmem:[%s4012_s7] ss:$0 sm:$0xff] }
  0x11   :  { %3127 = vmatprep.subr.bf16.mxu1 %v3464_v41  ;;  %v3678_v17 = vpack.c.bf16 %v247_v15, %v246_v14 }
  0x12   :  { %3102 = vmatpush3.bf16.msra.mxu0 %v3099_v20 }
  0x13   :  { %3104 = vmatprep.subr.bf16.mxu0 %v3103_v23 }
  0x16   :  { %3106 = vmatpush3.bf16.msra.mxu0 %v3103_v23 }
  0x17   :  { %3108 = vmatprep.subr.bf16.mxu0 %v3107_v26 }
  0x1a   :  { %3110 = vmatpush3.bf16.msra.mxu0 %v3107_v26 }
  0x1b   :  { %3112 = vmatprep.subr.bf16.mxu0 %v3111_v29 }
  0x1e   :  { %3114 = vmatpush3.bf16.msra.mxu0 %v3111_v29 }
  0x1f   :  { %3116 = vmatprep.subr.bf16.mxu0 %v3115_v32 }
  0x22   :  { %3118 = vmatpush3.bf16.msra.mxu0 %v3115_v32 }
  0x23   :  { %3145 = vmatprep.subr.bf16.mxu0 %v3464_v41 }
  0x81   :  { %v42_v35 = vpop.permute.xlu0 %41 }
  0x82   :  { %vm46_vm0 = vcmp.eq.s32.totalorder %v39_v34, %v42_v35 }
  0x83   :  { %2798 = vmatprep.mubr.msk.f32.mxu0 %vm46_vm0, %v3463_v36 }
  0x85   :  { %v45_v37 = vpop.permute.xlu0 %44 }
  0x86   :  { %vm47_vm1 = vcmp.eq.s32.totalorder %v39_v34, %v45_v37 }
  0x87   :  { %2799 = vmatmul.mubr.msk.f32.vlgmr.msra.gmra.mrb[0].mxu0 %vm47_vm1, %v3463_v36 }
  0x88   :  { %3147 = vmatpush3.bf16.msra.mxu0 %v3597_v40  ;;  %2853 = vmatprep.mubr.msk.f32.mxu0 %vm3465_vm2, %v3466_v45 }
  0x89   :  { %3148 = vmatprep.subr.bf16.mxu0 %v3464_v41 }
  0x8c   :  { %3150 = vmatpush3.bf16.msra.mxu0 %v3609_v44 }
  0x8d   :  { %3163 = vmatprep.subr.bf16.mxu0 %v3464_v41 }
 0x15a   :  { %v2800_v46 = vpop.f32.mrb[0].mxu0 }
 0x15b   :  { %v134_v47 = vpop.f32.mrb[1].mxu0 }
 0x15c   :  { %2809 = vmatprep.mubr.msk.f32.mxu1 %vm154_vm3, %v134_v47 }
 0x15d   :  { %2810 = vmatmul.mubr.msk.f32.vlgmr.msra.gmra.mrb[0].mxu1 %vm154_vm3, %v2800_v46 }
 0x15e   :  { %3129 = vmatpush3.bf16.msra.mxu1 %v3597_v40  ;;  %2820 = vmatprep.mubr.msk.f32.mxu1 %vm3465_vm2, %v3466_v45 }
 0x15f   :  { %3130 = vmatprep.subr.bf16.mxu1 %v3464_v41 }
 0x162   :  { %3132 = vmatpush3.bf16.msra.mxu1 %v3609_v44 }
 0x163   :  { %3133 = vmatprep.subr.bf16.mxu1 %v3464_v41 }
 0x165   :  { %2821 = vmatmul.mubr.f32.vlgmr.msra.gmra.mrb[2].mxu1 %v3466_v45 }
 0x166   :  { %2831 = vmatprep.mubr.msk.f32.mxu1 %vm3465_vm2, %v3466_v45  ;;  %3135 = vmatpush3.bf16.msra.mxu1 %v3648_v5 }
 0x167   :  { %3136 = vmatprep.subr.bf16.mxu1 %v3464_v41 }
 0x16a   :  { %3138 = vmatpush3.bf16.msra.mxu1 %v3654_v7 }
 0x16b   :  { %3139 = vmatprep.subr.bf16.mxu1 %v3464_v41 }
 0x230   :  { %v2811_v49 = vpop.f32.mrb[0].mxu1 }
 0x231   :  { %v3629_v50 = vadd.f32 %v2811_v49, %v2573_v48  ;;  %v227_v51 = vpop.f32.mrb[1].mxu1 }
 0x232   :  { %v3631_v52 = vadd.f32 %v2573_v48, %v227_v51 }
 0x238   :  { %v318_v53 = vpop.f32.mrb[2].mxu1 }
 0x239   :  { %v322_v54 = vadd.f32 %v318_v53, %v3631_v52  ;;  %v2822_v55 = vpop.f32.mrb[3].mxu1 }
 0x23b   :  { %3310 = vtanh.f32 %v322_v54  ;;  %v2576_v57 = vmul.f32 -1.442695, %v322_v54 }
 0x23d   :  { %3312 = vpow2.f32 %v2576_v57 }
 0x245   :  { %v3311_v56 = vpop.eup %3310 }
 0x246   :  { %332 = vrot.lane.b32.xlu1 %v3311_v56, %s3467_s22 }
 0x247   :  { %v3313_v58 = vpop.eup %3312 }
 0x248   :  { %v326_v59 = vadd.f32 1.0, %v3313_v58 }
 0x24a   :  { %3314 = vrcp.f32 %v326_v59 }
 0x254   :  { %v3315_v60 = vpop.eup %3314 }
 0x255   :  { %v330_v63 = vmul.f32 0.0, %v3315_v60 }
 0x2b8   :  { %v333_v61 = vpop.permute.xlu1 %332 }
 0x2b9   :  { %v335_v62 = vmul.f32 %v3315_v60, %v333_v61 }
 0x2bb   :  { %337 = vrot.lane.b32.xlu1 %v335_v62, %s3468_s4 }
 0x32d   :  { %v338_v0 = vpop.permute.xlu1 %337 }
 0x32e   :  { %v3636_v1 = vadd.f32 %v338_v0, %v330_v63 }
 0x330   :  { %3316 = vtanh.f32 %v3636_v1  ;;  %v606_v42 = vrot.slane %v3636_v1, 6 }
 0x33a   :  { %v3317_v8 = vpop.eup %3316 }
 0x33b   :  { %343 = vrot.lane.b32.xlu0 %v3317_v8, %s3467_s22 }
 0x3ad   :  { %v344_v9 = vpop.permute.xlu0 %343 }
 0x3ae   :  { %v346_v10 = vmul.f32 %v3315_v60, %v344_v9 }
 0x3b0   :  { %354 = vrot.lane.b32.xlu1 %v346_v10, %s3468_s4 }
 0x422   :  { %v355_v16 = vpop.permute.xlu1 %354 }
 0x423   :  { %2832 = vmatmul.mubr.msk.f32.vlgmr.msra.gmra.mrb[4].mxu1 %vm154_vm3, %v355_v16  ;;  %2854 = vmatmul.mubr.msk.f32.vlgmr.msra.gmra.mrb[2].mxu0 %vm154_vm3, %v355_v16 }
 0x424   :  { %3141 = vmatpush3.bf16.msra.mxu1 %v3667_v13  ;;  %2842 = vmatprep.mubr.msk.f32.mxu1 %vm3465_vm2, %v3466_v45 }
 0x425   :  { %3142 = vmatprep.subr.bf16.mxu1 %v3464_v41  ;;  %3165 = vmatpush3.bf16.msra.mxu0 %v3597_v40 }
 0x426   :  { %3166 = vmatprep.subr.bf16.mxu0 %v3464_v41  ;;  %2886 = vmatprep.mubr.msk.f32.mxu0 %vm3465_vm2, %v3466_v45 }
 0x428   :  { %3144 = vmatpush3.bf16.msra.mxu1 %v3678_v17 }
 0x429   :  { %3151 = vmatprep.subr.bf16.mxu1 %v3464_v41  ;;  %3168 = vmatpush3.bf16.msra.mxu0 %v3609_v44 }
 0x42a   :  { %3169 = vmatprep.subr.bf16.mxu0 %v3464_v41 }
 0x42b   :  { %2843 = vmatmul.mubr.f32.vlgmr.msra.gmra.mrb[4].mxu1 %v3466_v45 }
 0x42c   :  { %3153 = vmatpush3.bf16.msra.mxu1 %v3648_v5  ;;  %2864 = vmatprep.mubr.msk.f32.mxu1 %vm3465_vm2, %v3466_v45 }
 0x42d   :  { %3154 = vmatprep.subr.bf16.mxu1 %v3464_v41 }
 0x430   :  { %3156 = vmatpush3.bf16.msra.mxu1 %v3654_v7 }
 0x431   :  { %3157 = vmatprep.subr.bf16.mxu1 %v3464_v41 }
 0x4f6   :  { %v590_v18 = vpop.f32.mrb[2].mxu0 }
 0x4f7   :  { %v595_v19 = vrot.slane %v590_v18, 6  ;;  %v2855_v20 = vpop.f32.mrb[3].mxu0 }
 0x4f9   :  { %v597_v21 = vadd.f32 %v595_v19, %v3631_v52 }
 0x4fb   :  { %3318 = vtanh.f32 %v597_v21  ;;  %v2581_v28 = vmul.f32 -1.442695, %v597_v21 }
 0x4fe   :  { %v494_v23 = vpop.f32.mrb[4].mxu1 }
 0x4ff   :  { %v3277_v24 = vadd.f32 %v3702_v22, %v494_v23  ;;  %v2844_v25 = vpop.f32.mrb[5].mxu1 }
 0x501   :  { %3320 = vtanh.f32 %v3277_v24  ;;  %v2579_v29 = vmul.f32 -1.442695, %v3277_v24 }
 0x502   :  { %3322 = vpow2.f32 %v2581_v28 }
 0x503   :  { %3324 = vpow2.f32 %v2579_v29 }
 0x505   :  { %v3319_v26 = vpop.eup %3318 }
 0x506   :  { %610 = vrot.lane.b32.xlu0 %v3319_v26, %s3467_s22 }
 0x50b   :  { %v3321_v27 = vpop.eup %3320 }
 0x50c   :  { %508 = vrot.lane.b32.xlu1 %v3321_v27, %s3467_s22  ;;  %v3323_v30 = vpop.eup %3322 }
 0x50d   :  { %v601_v31 = vadd.f32 1.0, %v3323_v30  ;;  %v3325_v32 = vpop.eup %3324 }
 0x50e   :  { %v502_v33 = vadd.f32 1.0, %v3325_v32 }
 0x50f   :  { %3326 = vrcp.f32 %v601_v31 }
 0x510   :  { %3328 = vrcp.f32 %v502_v33 }
 0x519   :  { %v3327_v34 = vpop.eup %3326 }
 0x51a   :  { %v3329_v37 = vpop.eup %3328  ;;  %v608_v43 = vmul.f32 %v3327_v34, %v606_v42 }
 0x51b   :  { %v506_v48 = vmul.f32 0.0, %v3329_v37 }
 0x578   :  { %v611_v35 = vpop.permute.xlu0 %610 }
 0x579   :  { %v613_v36 = vmul.f32 %v3327_v34, %v611_v35 }
 0x57b   :  { %615 = vrot.lane.b32.xlu0 %v613_v36, %s3468_s4 }
 0x57e   :  { %v509_v38 = vpop.permute.xlu1 %508 }
 0x57f   :  { %v511_v39 = vmul.f32 %v3329_v37, %v509_v38 }
 0x581   :  { %513 = vrot.lane.b32.xlu1 %v511_v39, %s3468_s4 }
 0x5ed   :  { %v616_v46 = vpop.permute.xlu0 %615 }
 0x5ee   :  { %v3710_v47 = vadd.f32 %v616_v46, %v608_v43 }
 0x5f0   :  { %3330 = vtanh.f32 %v3710_v47  ;;  %v884_v24 = vrot.slane %v3710_v47, 6 }
 0x5f3   :  { %v514_v49 = vpop.permute.xlu1 %513 }
 0x5f4   :  { %v3713_v51 = vadd.f32 %v514_v49, %v506_v48 }
 0x5f6   :  { %3332 = vtanh.f32 %v3713_v51 }
 0x5fa   :  { %v3331_v53 = vpop.eup %3330 }
 0x5fb   :  { %621 = vrot.lane.b32.xlu0 %v3331_v53, %s3467_s22 }
 0x600   :  { %v3333_v54 = vpop.eup %3332 }
 0x601   :  { %519 = vrot.lane.b32.xlu1 %v3333_v54, %s3467_s22 }
 0x66d   :  { %v622_v55 = vpop.permute.xlu0 %621 }
 0x66e   :  { %v624_v56 = vmul.f32 %v3327_v34, %v622_v55 }
 0x670   :  { %v626_v57 = vrot.slane %v624_v56, 2 }
 0x672   :  { %627 = vrot.lane.b32.xlu0 %v626_v57, %s3468_s4 }
 0x673   :  { %v520_v58 = vpop.permute.xlu1 %519 }
 0x674   :  { %v3719_v59 = vmul.f32 %v3329_v37, %v520_v58 }
 0x676   :  { %702 = vrot.lane.b32.xlu1 %v3719_v59, %s3468_s4 }
 0x6e4   :  { %v628_v60 = vpop.permute.xlu0 %627 }
 0x6e5   :  { %2865 = vmatmul.mubr.msk.f32.vlgmr.msra.gmra.mrb[6].mxu1 %vm154_vm3, %v628_v60  ;;  %2887 = vmatmul.mubr.msk.f32.vlgmr.msra.gmra.mrb[4].mxu0 %vm154_vm3, %v628_v60 }
 0x6e6   :  { %3159 = vmatpush3.bf16.msra.mxu1 %v3667_v13  ;;  %2875 = vmatprep.mubr.msk.f32.mxu1 %vm3465_vm2, %v3466_v45 }
 0x6e7   :  { %3160 = vmatprep.subr.bf16.mxu1 %v3464_v41  ;;  %3171 = vmatpush3.bf16.msra.mxu0 %v3648_v5 }
 0x6e8   :  { %3172 = vmatprep.subr.bf16.mxu0 %v3464_v41  ;;  %2897 = vmatprep.mubr.msk.f32.mxu0 %vm3465_vm2, %v3466_v45  ;;  %v703_v61 = vpop.permute.xlu1 %702 }
 0x6ea   :  { %3162 = vmatpush3.bf16.msra.mxu1 %v3678_v17 }
 0x6eb   :  { %3181 = vmatprep.subr.bf16.mxu1 %v3464_v41  ;;  %3174 = vmatpush3.bf16.msra.mxu0 %v3654_v7 }
 0x6ec   :  { %3175 = vmatprep.subr.bf16.mxu0 %v3464_v41 }
 0x6ed   :  { %2876 = vmatmul.mubr.msk.f32.vlgmr.msra.gmra.mrb[6].mxu1 %vm154_vm3, %v703_v61 }
 0x6ee   :  { %3183 = vmatpush3.bf16.msra.mxu1 %v3597_v40  ;;  %2919 = vmatprep.mubr.msk.f32.mxu1 %vm3465_vm2, %v3466_v45 }
 0x6ef   :  { %3184 = vmatprep.subr.bf16.mxu1 %v3464_v41 }
 0x6f2   :  { %3186 = vmatpush3.bf16.msra.mxu1 %v3609_v44 }
 0x6f3   :  { %3187 = vmatprep.subr.bf16.mxu1 %v3464_v41 }
 0x7b8   :  { %v868_v62 = vpop.f32.mrb[4].mxu0 }
 0x7b9   :  { %v873_v63 = vrot.slane %v868_v62, 4  ;;  %v2888_v0 = vpop.f32.mrb[5].mxu0 }
 0x7bb   :  { %v875_v1 = vadd.f32 %v873_v63, %v3631_v52 }
 0x7bd   :  { %3334 = vtanh.f32 %v875_v1  ;;  %v2586_v9 = vmul.f32 -1.442695, %v875_v1 }
 0x7c0   :  { %v772_v2 = vpop.f32.mrb[6].mxu1 }
 0x7c1   :  { %v3278_v3 = vadd.f32 %v3702_v22, %v772_v2  ;;  %v2877_v4 = vpop.f32.mrb[7].mxu1 }
 0x7c3   :  { %3336 = vtanh.f32 %v3278_v3  ;;  %v2584_v10 = vmul.f32 -1.442695, %v3278_v3 }
 0x7c4   :  { %3338 = vpow2.f32 %v2586_v9 }
 0x7c5   :  { %3340 = vpow2.f32 %v2584_v10 }
 0x7c7   :  { %v3335_v6 = vpop.eup %3334 }
 0x7c8   :  { %888 = vrot.lane.b32.xlu0 %v3335_v6, %s3467_s22 }
 0x7cd   :  { %v3337_v8 = vpop.eup %3336 }
 0x7ce   :  { %786 = vrot.lane.b32.xlu1 %v3337_v8, %s3467_s22  ;;  %v3339_v11 = vpop.eup %3338 }
 0x7cf   :  { %v879_v12 = vadd.f32 1.0, %v3339_v11  ;;  %v3341_v14 = vpop.eup %3340 }
 0x7d0   :  { %v780_v15 = vadd.f32 1.0, %v3341_v14 }
 0x7d1   :  { %3342 = vrcp.f32 %v879_v12 }
 0x7d2   :  { %3344 = vrcp.f32 %v780_v15 }
 0x7db   :  { %v3343_v16 = vpop.eup %3342 }
 0x7dc   :  { %v3345_v20 = vpop.eup %3344  ;;  %v886_v25 = vmul.f32 %v3343_v16, %v884_v24 }
 0x7dd   :  { %v784_v28 = vmul.f32 %v3345_v20, %v3713_v51 }
 0x83a   :  { %v889_v18 = vpop.permute.xlu0 %888 }
 0x83b   :  { %v891_v19 = vmul.f32 %v3343_v16, %v889_v18 }
 0x83d   :  { %893 = vrot.lane.b32.xlu0 %v891_v19, %s3468_s4 }
 0x840   :  { %v787_v21 = vpop.permute.xlu1 %786 }
 0x841   :  { %v789_v23 = vmul.f32 %v3345_v20, %v787_v21 }
 0x843   :  { %791 = vrot.lane.b32.xlu1 %v789_v23, %s3468_s4 }
 0x8af   :  { %v894_v26 = vpop.permute.xlu0 %893 }
 0x8b0   :  { %v3751_v27 = vadd.f32 %v894_v26, %v886_v25 }
 0x8b2   :  { %3346 = vtanh.f32 %v3751_v27  ;;  %v1162_v3 = vrot.slane %v3751_v27, 6 }
 0x8b5   :  { %v792_v29 = vpop.permute.xlu1 %791 }
 0x8b6   :  { %v3755_v30 = vadd.f32 %v792_v29, %v784_v28 }
 0x8b8   :  { %3348 = vtanh.f32 %v3755_v30 }
 0x8bc   :  { %v3347_v31 = vpop.eup %3346 }
 0x8bd   :  { %899 = vrot.lane.b32.xlu0 %v3347_v31, %s3467_s22 }
 0x8c2   :  { %v3349_v32 = vpop.eup %3348 }
 0x8c3   :  { %797 = vrot.lane.b32.xlu1 %v3349_v32, %s3467_s22 }
 0x92f   :  { %v900_v33 = vpop.permute.xlu0 %899 }
 0x930   :  { %v902_v34 = vmul.f32 %v3343_v16, %v900_v33 }
 0x932   :  { %v904_v35 = vrot.slane %v902_v34, 4 }
 0x934   :  { %905 = vrot.lane.b32.xlu0 %v904_v35, %s3468_s4 }
 0x935   :  { %v798_v36 = vpop.permute.xlu1 %797 }
 0x936   :  { %v3761_v37 = vmul.f32 %v3345_v20, %v798_v36 }
 0x938   :  { %980 = vrot.lane.b32.xlu1 %v3761_v37, %s3468_s4  ;;  %v801_v20 = vadd.f32 %v3761_v37, %v3719_v59 }
 0x9a6   :  { %v906_v38 = vpop.permute.xlu0 %905 }
 0x9a7   :  { %2898 = vmatmul.mubr.msk.f32.vlgmr.msra.gmra.mrb[6].mxu0 %vm154_vm3, %v906_v38  ;;  %2920 = vmatmul.mubr.msk.f32.vlgmr.msra.gmra.mrb[8].mxu1 %vm154_vm3, %v906_v38 }
 0x9a8   :  { %3177 = vmatpush3.bf16.msra.mxu0 %v3667_v13  ;;  %2908 = vmatprep.mubr.msk.f32.mxu0 %vm3465_vm2, %v3466_v45 }
 0x9a9   :  { %3178 = vmatprep.subr.bf16.mxu0 %v3464_v41  ;;  %3189 = vmatpush3.bf16.msra.mxu1 %v3648_v5 }
 0x9aa   :  { %3190 = vmatprep.subr.bf16.mxu1 %v3464_v41  ;;  %2930 = vmatprep.mubr.msk.f32.mxu1 %vm3465_vm2, %v3466_v45  ;;  %v981_v39 = vpop.permute.xlu1 %980 }
 0x9ac   :  { %3180 = vmatpush3.bf16.msra.mxu0 %v3678_v17 }
 0x9ad   :  { %3199 = vmatprep.subr.bf16.mxu0 %v3464_v41  ;;  %3192 = vmatpush3.bf16.msra.mxu1 %v3654_v7 }
 0x9ae   :  { %3193 = vmatprep.subr.bf16.mxu1 %v3464_v41 }
 0x9af   :  { %2909 = vmatmul.mubr.msk.f32.vlgmr.msra.gmra.mrb[6].mxu0 %vm154_vm3, %v981_v39 }
 0x9b0   :  { %3201 = vmatpush3.bf16.msra.mxu0 %v3597_v40  ;;  %2952 = vmatprep.mubr.msk.f32.mxu0 %vm3465_vm2, %v3466_v45 }
 0x9b1   :  { %3202 = vmatprep.subr.bf16.mxu0 %v3464_v41 }
 0x9b4   :  { %3204 = vmatpush3.bf16.msra.mxu0 %v3609_v44 }
 0x9b5   :  { %3205 = vmatprep.subr.bf16.mxu0 %v3464_v41 }
 0xa7a   :  { %v1146_v42 = vpop.f32.mrb[8].mxu1 }
 0xa7b   :  { %v1151_v43 = vrot.slane %v1146_v42, 2  ;;  %v2921_v46 = vpop.f32.mrb[9].mxu1 }
 0xa7d   :  { %v1153_v47 = vadd.f32 %v1151_v43, %v3631_v52 }
 0xa7f   :  { %3350 = vtanh.f32 %v1153_v47  ;;  %v2591_v55 = vmul.f32 -1.442695, %v1153_v47 }
 0xa82   :  { %v1050_v48 = vpop.f32.mrb[6].mxu0 }
 0xa83   :  { %v3279_v49 = vadd.f32 %v3702_v22, %v1050_v48  ;;  %v2910_v51 = vpop.f32.mrb[7].mxu0 }
 0xa85   :  { %3352 = vtanh.f32 %v3279_v49  ;;  %v2589_v56 = vmul.f32 -1.442695, %v3279_v49 }
 0xa86   :  { %3354 = vpow2.f32 %v2591_v55 }
 0xa87   :  { %3356 = vpow2.f32 %v2589_v56 }
 0xa89   :  { %v3351_v53 = vpop.eup %3350 }
 0xa8a   :  { %1166 = vrot.lane.b32.xlu0 %v3351_v53, %s3467_s22 }
 0xa8f   :  { %v3353_v54 = vpop.eup %3352 }
 0xa90   :  { %1064 = vrot.lane.b32.xlu1 %v3353_v54, %s3467_s22  ;;  %v3355_v57 = vpop.eup %3354 }
 0xa91   :  { %v1157_v58 = vadd.f32 1.0, %v3355_v57  ;;  %v3357_v60 = vpop.eup %3356 }
 0xa92   :  { %v1058_v52 = vadd.f32 1.0, %v3357_v60 }
 0xa93   :  { %3358 = vrcp.f32 %v1157_v58 }
 0xa94   :  { %3360 = vrcp.f32 %v1058_v52 }
 0xa9d   :  { %v3359_v61 = vpop.eup %3358 }
 0xa9e   :  { %v3361_v0 = vpop.eup %3360  ;;  %v1164_v4 = vmul.f32 %v3359_v61, %v1162_v3 }
 0xa9f   :  { %v1062_v9 = vmul.f32 %v3361_v0, %v3755_v30 }
 0xafc   :  { %v1167_v62 = vpop.permute.xlu0 %1166 }
 0xafd   :  { %v1169_v63 = vmul.f32 %v3359_v61, %v1167_v62 }
 0xaff   :  { %1171 = vrot.lane.b32.xlu0 %v1169_v63, %s3468_s4 }
 0xb02   :  { %v1065_v1 = vpop.permute.xlu1 %1064 }
 0xb03   :  { %v1067_v2 = vmul.f32 %v3361_v0, %v1065_v1 }
 0xb05   :  { %1069 = vrot.lane.b32.xlu1 %v1067_v2, %s3468_s4 }
 0xb71   :  { %v1172_v6 = vpop.permute.xlu0 %1171 }
 0xb72   :  { %v3793_v8 = vadd.f32 %v1172_v6, %v1164_v4 }
 0xb74   :  { %3362 = vtanh.f32 %v3793_v8  ;;  %v1437_v49 = vrot.slane %v3793_v8, 6 }
 0xb77   :  { %v1070_v10 = vpop.permute.xlu1 %1069 }
 0xb78   :  { %v3797_v11 = vadd.f32 %v1070_v10, %v1062_v9 }
 0xb7a   :  { %3364 = vtanh.f32 %v3797_v11 }
 0xb7e   :  { %v3363_v12 = vpop.eup %3362 }
 0xb7f   :  { %1177 = vrot.lane.b32.xlu0 %v3363_v12, %s3467_s22 }
 0xb84   :  { %v3365_v14 = vpop.eup %3364 }
 0xb85   :  { %1075 = vrot.lane.b32.xlu1 %v3365_v14, %s3467_s22 }
 0xbf1   :  { %v1178_v15 = vpop.permute.xlu0 %1177 }
 0xbf2   :  { %v1180_v16 = vmul.f32 %v3359_v61, %v1178_v15 }
 0xbf4   :  { %v1182_v18 = vrot.slane %v1180_v16, 6 }
 0xbf6   :  { %1183 = vrot.lane.b32.xlu0 %v1182_v18, %s3468_s4 }
 0xbf7   :  { %v1076_v19 = vpop.permute.xlu1 %1075 }
 0xbf8   :  { %v1078_v21 = vmul.f32 %v3361_v0, %v1076_v19 }
 0xbfa   :  { %v3805_v23 = vadd.f32 %v1078_v21, %v801_v20  ;;  %1258 = vrot.lane.b32.xlu1 %v1078_v21, %s3468_s4 }
 0xc68   :  { %v1184_v24 = vpop.permute.xlu0 %1183 }
 0xc69   :  { %2931 = vmatmul.mubr.msk.f32.vlgmr.msra.gmra.mrb[10].mxu1 %vm154_vm3, %v1184_v24  ;;  %2953 = vmatmul.mubr.msk.f32.vlgmr.msra.gmra.mrb[8].mxu0 %vm154_vm3, %v1184_v24 }
 0xc6a   :  { %3195 = vmatpush3.bf16.msra.mxu1 %v3667_v13  ;;  %2941 = vmatprep.mubr.msk.f32.mxu1 %vm3465_vm2, %v3466_v45 }
 0xc6b   :  { %3196 = vmatprep.subr.bf16.mxu1 %v3464_v41  ;;  %3207 = vmatpush3.bf16.msra.mxu0 %v3648_v5 }
 0xc6c   :  { %3208 = vmatprep.subr.bf16.mxu0 %v3464_v41  ;;  %2963 = vmatprep.mubr.msk.f32.mxu0 %vm3465_vm2, %v3466_v45  ;;  %v1259_v59 = vpop.permute.xlu1 %1258 }
 0xc6e   :  { %3198 = vmatpush3.bf16.msra.mxu1 %v3678_v17 }
 0xc6f   :  { %3217 = vmatprep.subr.bf16.mxu1 %v3464_v41  ;;  %3210 = vmatpush3.bf16.msra.mxu0 %v3654_v7 }
 0xc70   :  { %3211 = vmatprep.subr.bf16.mxu0 %v3464_v41 }
 0xc71   :  { %2942 = vmatmul.mubr.msk.f32.vlgmr.msra.gmra.mrb[10].mxu1 %vm154_vm3, %v1259_v59 }
 0xc72   :  { %3219 = vmatpush3.bf16.msra.mxu1 %v3597_v40  ;;  %2985 = vmatprep.mubr.msk.f32.mxu1 %vm3465_vm2, %v3466_v45 }
 0xc73   :  { %3220 = vmatprep.subr.bf16.mxu1 %v3464_v41 }
 0xc76   :  { %3222 = vmatpush3.bf16.msra.mxu1 %v3609_v44 }
 0xc77   :  { %3223 = vmatprep.subr.bf16.mxu1 %v3464_v41 }
 0xd3c   :  { %v1424_v25 = vpop.f32.mrb[8].mxu0 }
 0xd3d   :  { %v1428_v26 = vadd.f32 %v1424_v25, %v3629_v50  ;;  %v2954_v27 = vpop.f32.mrb[9].mxu0 }
 0xd3f   :  { %3366 = vtanh.f32 %v1428_v26  ;;  %v2596_v33 = vmul.f32 -1.442695, %v1428_v26 }
 0xd44   :  { %v1328_v28 = vpop.f32.mrb[10].mxu1 }
 0xd45   :  { %v3280_v29 = vadd.f32 %v3702_v22, %v1328_v28  ;;  %v2943_v30 = vpop.f32.mrb[11].mxu1 }
 0xd47   :  { %3368 = vtanh.f32 %v3280_v29  ;;  %v2594_v34 = vmul.f32 -1.442695, %v3280_v29 }
 0xd48   :  { %3370 = vpow2.f32 %v2596_v33 }
 0xd49   :  { %v3367_v31 = vpop.eup %3366  ;;  %3372 = vpow2.f32 %v2594_v34 }
 0xd4a   :  { %1441 = vrot.lane.b32.xlu0 %v3367_v31, %s3467_s22 }
 0xd51   :  { %v3369_v32 = vpop.eup %3368 }
 0xd52   :  { %1342 = vrot.lane.b32.xlu1 %v3369_v32, %s3467_s22  ;;  %v3371_v35 = vpop.eup %3370 }
 0xd53   :  { %v1432_v36 = vadd.f32 1.0, %v3371_v35  ;;  %v3373_v37 = vpop.eup %3372 }
 0xd54   :  { %v1336_v38 = vadd.f32 1.0, %v3373_v37 }
 0xd55   :  { %3374 = vrcp.f32 %v1432_v36 }
 0xd56   :  { %3376 = vrcp.f32 %v1336_v38 }
 0xd5f   :  { %v3375_v39 = vpop.eup %3374 }
 0xd60   :  { %v3377_v46 = vpop.eup %3376  ;;  %v1439_v51 = vmul.f32 %v3375_v39, %v1437_v49 }
 0xd61   :  { %v1340_v55 = vmul.f32 %v3377_v46, %v3797_v11 }
 0xdbc   :  { %v1442_v42 = vpop.permute.xlu0 %1441 }
 0xdbd   :  { %v1444_v43 = vmul.f32 %v3375_v39, %v1442_v42 }
 0xdbf   :  { %1446 = vrot.lane.b32.xlu0 %v1444_v43, %s3468_s4 }
 0xdc4   :  { %v1343_v47 = vpop.permute.xlu1 %1342 }
 0xdc5   :  { %v1345_v48 = vmul.f32 %v3377_v46, %v1343_v47 }
 0xdc7   :  { %1347 = vrot.lane.b32.xlu1 %v1345_v48, %s3468_s4 }
 0xe31   :  { %v1447_v53 = vpop.permute.xlu0 %1446 }
 0xe32   :  { %v3836_v54 = vadd.f32 %v1447_v53, %v1439_v51 }
 0xe34   :  { %3378 = vtanh.f32 %v3836_v54  ;;  %v1714_v28 = vrot.slane %v3836_v54, 6 }
 0xe39   :  { %v1348_v56 = vpop.permute.xlu1 %1347 }
 0xe3a   :  { %v3840_v57 = vadd.f32 %v1348_v56, %v1340_v55 }
 0xe3c   :  { %3380 = vtanh.f32 %v3840_v57 }
 0xe3e   :  { %v3379_v58 = vpop.eup %3378 }
 0xe3f   :  { %1452 = vrot.lane.b32.xlu0 %v3379_v58, %s3467_s22 }
 0xe46   :  { %v3381_v60 = vpop.eup %3380 }
 0xe47   :  { %1353 = vrot.lane.b32.xlu1 %v3381_v60, %s3467_s22 }
 0xeb1   :  { %v1453_v52 = vpop.permute.xlu0 %1452 }
 0xeb2   :  { %v1455_v61 = vmul.f32 %v3375_v39, %v1453_v52 }
 0xeb4   :  { %1457 = vrot.lane.b32.xlu0 %v1455_v61, %s3468_s4 }
 0xeb9   :  { %v1354_v62 = vpop.permute.xlu1 %1353 }
 0xeba   :  { %v1356_v63 = vmul.f32 %v3377_v46, %v1354_v62 }
 0xebc   :  { %v3847_v0 = vadd.f32 %v1356_v63, %v3805_v23  ;;  %1532 = vrot.lane.b32.xlu1 %v1356_v63, %s3468_s4 }
 0xf26   :  { %v1458_v1 = vpop.permute.xlu0 %1457 }
 0xf27   :  { %2964 = vmatmul.mubr.msk.f32.vlgmr.msra.gmra.mrb[10].mxu0 %vm154_vm3, %v1458_v1  ;;  %2986 = vmatmul.mubr.msk.f32.vlgmr.msra.gmra.mrb[12].mxu1 %vm154_vm3, %v1458_v1 }
 0xf28   :  { %3213 = vmatpush3.bf16.msra.mxu0 %v3667_v13  ;;  %2974 = vmatprep.mubr.msk.f32.mxu0 %vm3465_vm2, %v3466_v45 }
 0xf29   :  { %3214 = vmatprep.subr.bf16.mxu0 %v3464_v41  ;;  %3225 = vmatpush3.bf16.msra.mxu1 %v3648_v5 }
 0xf2a   :  { %3226 = vmatprep.subr.bf16.mxu1 %v3464_v41  ;;  %2996 = vmatprep.mubr.msk.f32.mxu1 %vm3465_vm2, %v3466_v45 }
 0xf2c   :  { %3216 = vmatpush3.bf16.msra.mxu0 %v3678_v17 }
 0xf2d   :  { %3235 = vmatprep.subr.bf16.mxu0 %v3464_v41  ;;  %3228 = vmatpush3.bf16.msra.mxu1 %v3654_v7 }
 0xf2e   :  { %v1533_v2 = vpop.permute.xlu1 %1532  ;;  %3229 = vmatprep.subr.bf16.mxu1 %v3464_v41 }
 0xf2f   :  { %2975 = vmatmul.mubr.msk.f32.vlgmr.msra.gmra.mrb[10].mxu0 %vm154_vm3, %v1533_v2 }
 0xf30   :  { %3237 = vmatpush3.bf16.msra.mxu0 %v3597_v40  ;;  %3018 = vmatprep.mubr.msk.f32.mxu0 %vm3465_vm2, %v3466_v45 }
 0xf31   :  { %3238 = vmatprep.subr.bf16.mxu0 %v3464_v41 }
 0xf34   :  { %3240 = vmatpush3.bf16.msra.mxu0 %v3609_v44 }
 0xf35   :  { %3241 = vmatprep.subr.bf16.mxu0 %v3464_v41 }
 0xffa   :  { %v1698_v3 = vpop.f32.mrb[12].mxu1 }
 0xffb   :  { %v1703_v4 = vrot.slane %v1698_v3, 6  ;;  %v2987_v6 = vpop.f32.mrb[13].mxu1 }
 0xffd   :  { %v1705_v8 = vadd.f32 %v1703_v4, %v3629_v50 }
 0xfff   :  { %3382 = vtanh.f32 %v1705_v8  ;;  %v2601_v15 = vmul.f32 -1.442695, %v1705_v8 }
0x1002   :  { %v1602_v9 = vpop.f32.mrb[10].mxu0 }
0x1003   :  { %v3281_v10 = vadd.f32 %v3702_v22, %v1602_v9  ;;  %v2976_v11 = vpop.f32.mrb[11].mxu0 }
0x1005   :  { %3384 = vtanh.f32 %v3281_v10  ;;  %v2599_v16 = vmul.f32 -1.442695, %v3281_v10 }
0x1006   :  { %3386 = vpow2.f32 %v2601_v15 }
0x1007   :  { %3388 = vpow2.f32 %v2599_v16 }
0x1009   :  { %v3383_v12 = vpop.eup %3382 }
0x100a   :  { %1718 = vrot.lane.b32.xlu0 %v3383_v12, %s3467_s22 }
0x100f   :  { %v3385_v14 = vpop.eup %3384 }
0x1010   :  { %1616 = vrot.lane.b32.xlu1 %v3385_v14, %s3467_s22  ;;  %v3387_v18 = vpop.eup %3386 }
0x1011   :  { %v1709_v19 = vadd.f32 1.0, %v3387_v18  ;;  %v3389_v20 = vpop.eup %3388 }
0x1012   :  { %v1610_v21 = vadd.f32 1.0, %v3389_v20 }
0x1013   :  { %3390 = vrcp.f32 %v1709_v19 }
0x1014   :  { %3392 = vrcp.f32 %v1610_v21 }
0x101d   :  { %v3391_v23 = vpop.eup %3390 }
0x101e   :  { %v3393_v25 = vpop.eup %3392  ;;  %v1716_v29 = vmul.f32 %v3391_v23, %v1714_v28 }
0x101f   :  { %v1614_v32 = vmul.f32 %v3393_v25, %v3840_v57 }
0x107c   :  { %v1719_v24 = vpop.permute.xlu0 %1718 }
0x107d   :  { %v1721_v59 = vmul.f32 %v3391_v23, %v1719_v24 }
0x107f   :  { %1723 = vrot.lane.b32.xlu0 %v1721_v59, %s3468_s4 }
0x1082   :  { %v1617_v26 = vpop.permute.xlu1 %1616 }
0x1083   :  { %v1619_v27 = vmul.f32 %v3393_v25, %v1617_v26 }
0x1085   :  { %1621 = vrot.lane.b32.xlu1 %v1619_v27, %s3468_s4 }
0x10f1   :  { %v1724_v30 = vpop.permute.xlu0 %1723 }
0x10f2   :  { %v3878_v31 = vadd.f32 %v1724_v30, %v1716_v29 }
0x10f4   :  { %3394 = vtanh.f32 %v3878_v31  ;;  %v1992_v8 = vrot.slane %v3878_v31, 6 }
0x10f7   :  { %v1622_v33 = vpop.permute.xlu1 %1621 }
0x10f8   :  { %v3882_v34 = vadd.f32 %v1622_v33, %v1614_v32 }
0x10fa   :  { %3396 = vtanh.f32 %v3882_v34 }
0x10fe   :  { %v3395_v35 = vpop.eup %3394 }
0x10ff   :  { %1729 = vrot.lane.b32.xlu0 %v3395_v35, %s3467_s22 }
0x1104   :  { %v3397_v36 = vpop.eup %3396 }
0x1105   :  { %1627 = vrot.lane.b32.xlu1 %v3397_v36, %s3467_s22 }
0x1171   :  { %v1730_v37 = vpop.permute.xlu0 %1729 }
0x1172   :  { %v1732_v38 = vmul.f32 %v3391_v23, %v1730_v37 }
0x1174   :  { %v1734_v39 = vrot.slane %v1732_v38, 2 }
0x1176   :  { %1735 = vrot.lane.b32.xlu0 %v1734_v39, %s3468_s4 }
0x1177   :  { %v1628_v42 = vpop.permute.xlu1 %1627 }
0x1178   :  { %v1630_v43 = vmul.f32 %v3393_v25, %v1628_v42 }
0x117a   :  { %v3889_v46 = vadd.f32 %v1630_v43, %v3847_v0  ;;  %1810 = vrot.lane.b32.xlu1 %v1630_v43, %s3468_s4 }
0x11e8   :  { %v1736_v47 = vpop.permute.xlu0 %1735 }
0x11e9   :  { %2997 = vmatmul.mubr.msk.f32.vlgmr.msra.gmra.mrb[14].mxu1 %vm154_vm3, %v1736_v47  ;;  %3019 = vmatmul.mubr.msk.f32.vlgmr.msra.gmra.mrb[12].mxu0 %vm154_vm3, %v1736_v47 }
0x11ea   :  { %3231 = vmatpush3.bf16.msra.mxu1 %v3667_v13  ;;  %3007 = vmatprep.mubr.msk.f32.mxu1 %vm3465_vm2, %v3466_v45 }
0x11eb   :  { %3232 = vmatprep.subr.bf16.mxu1 %v3464_v41  ;;  %3243 = vmatpush3.bf16.msra.mxu0 %v3648_v5 }
0x11ec   :  { %3244 = vmatprep.subr.bf16.mxu0 %v3464_v41  ;;  %3029 = vmatprep.mubr.msk.f32.mxu0 %vm3465_vm2, %v3466_v45  ;;  %v1811_v48 = vpop.permute.xlu1 %1810 }
0x11ee   :  { %3234 = vmatpush3.bf16.msra.mxu1 %v3678_v17 }
0x11ef   :  { %3253 = vmatprep.subr.bf16.mxu1 %v3464_v41  ;;  %3246 = vmatpush3.bf16.msra.mxu0 %v3654_v7 }
0x11f0   :  { %3247 = vmatprep.subr.bf16.mxu0 %v3464_v41 }
0x11f1   :  { %3008 = vmatmul.mubr.msk.f32.vlgmr.msra.gmra.mrb[14].mxu1 %vm154_vm3, %v1811_v48 }
0x11f2   :  { %3255 = vmatpush3.bf16.msra.mxu1 %v3597_v40  ;;  %3051 = vmatprep.mubr.msk.f32.mxu1 %vm3465_vm2, %v3466_v45 }
0x11f3   :  { %3256 = vmatprep.subr.bf16.mxu1 %v3464_v41 }
0x11f6   :  { %3258 = vmatpush3.bf16.msra.mxu1 %v3609_v44 }
0x11f7   :  { %3259 = vmatprep.subr.bf16.mxu1 %v3464_v41 }
0x12bc   :  { %v1976_v49 = vpop.f32.mrb[12].mxu0 }
0x12bd   :  { %v1981_v51 = vrot.slane %v1976_v49, 4  ;;  %v3020_v53 = vpop.f32.mrb[13].mxu0 }
0x12bf   :  { %v1983_v54 = vadd.f32 %v1981_v51, %v3629_v50 }
0x12c1   :  { %3398 = vtanh.f32 %v1983_v54  ;;  %v2606_v44 = vmul.f32 -1.442695, %v1983_v54 }
0x12c4   :  { %v1880_v55 = vpop.f32.mrb[14].mxu1 }
0x12c5   :  { %v3282_v56 = vadd.f32 %v3702_v22, %v1880_v55  ;;  %v3009_v57 = vpop.f32.mrb[15].mxu1 }
0x12c7   :  { %3400 = vtanh.f32 %v3282_v56  ;;  %v2604_v60 = vmul.f32 -1.442695, %v3282_v56 }
0x12c8   :  { %3402 = vpow2.f32 %v2606_v44 }
0x12c9   :  { %3404 = vpow2.f32 %v2604_v60 }
0x12cb   :  { %v3399_v40 = vpop.eup %3398 }
0x12cc   :  { %1996 = vrot.lane.b32.xlu0 %v3399_v40, %s3467_s22 }
0x12d1   :  { %v3401_v58 = vpop.eup %3400 }
0x12d2   :  { %1894 = vrot.lane.b32.xlu1 %v3401_v58, %s3467_s22  ;;  %v3403_v52 = vpop.eup %3402 }
0x12d3   :  { %v1987_v61 = vadd.f32 1.0, %v3403_v52  ;;  %v3405_v62 = vpop.eup %3404 }
0x12d4   :  { %v1888_v63 = vadd.f32 1.0, %v3405_v62 }
0x12d5   :  { %3406 = vrcp.f32 %v1987_v61 }
0x12d6   :  { %3408 = vrcp.f32 %v1888_v63 }
0x12df   :  { %v3407_v0 = vpop.eup %3406 }
0x12e0   :  { %v3409_v3 = vpop.eup %3408  ;;  %v1994_v9 = vmul.f32 %v3407_v0, %v1992_v8 }
0x12e1   :  { %v1892_v12 = vmul.f32 %v3409_v3, %v3882_v34 }
0x133e   :  { %v1997_v1 = vpop.permute.xlu0 %1996 }
0x133f   :  { %v1999_v2 = vmul.f32 %v3407_v0, %v1997_v1 }
0x1341   :  { %2001 = vrot.lane.b32.xlu0 %v1999_v2, %s3468_s4 }
0x1344   :  { %v1895_v4 = vpop.permute.xlu1 %1894 }
0x1345   :  { %v1897_v6 = vmul.f32 %v3409_v3, %v1895_v4 }
0x1347   :  { %1899 = vrot.lane.b32.xlu1 %v1897_v6, %s3468_s4 }
0x13b3   :  { %v2002_v10 = vpop.permute.xlu0 %2001 }
0x13b4   :  { %v3920_v11 = vadd.f32 %v2002_v10, %v1994_v9 }
0x13b6   :  { %3410 = vtanh.f32 %v3920_v11  ;;  %v2270_v49 = vrot.slane %v3920_v11, 6 }
0x13b9   :  { %v1900_v14 = vpop.permute.xlu1 %1899 }
0x13ba   :  { %v3924_v15 = vadd.f32 %v1900_v14, %v1892_v12 }
0x13bc   :  { %3412 = vtanh.f32 %v3924_v15 }
0x13c0   :  { %v3411_v16 = vpop.eup %3410 }
0x13c1   :  { %2007 = vrot.lane.b32.xlu0 %v3411_v16, %s3467_s22  ;;  %v2469_v16 = vld [vmem:[%s4013_s8 + $0x10] sm:$0xff] }
0x13c6   :  { %v3413_v18 = vpop.eup %3412 }
0x13c7   :  { %1905 = vrot.lane.b32.xlu1 %v3413_v18, %s3467_s22 }
0x1433   :  { %v2008_v19 = vpop.permute.xlu0 %2007 }
0x1434   :  { %v2010_v20 = vmul.f32 %v3407_v0, %v2008_v19  ;;  %v2470_v19 = vld [vmem:[%s4013_s8 + $0x18] sm:$0xff] }
0x1436   :  { %v2012_v21 = vrot.slane %v2010_v20, 4  ;;  %v3275_v20 = vpack.c.bf16 %v2470_v19, %v2469_v16 }
0x1438   :  { %2013 = vrot.lane.b32.xlu0 %v2012_v21, %s3468_s4 }
0x1439   :  { %v1906_v23 = vpop.permute.xlu1 %1905 }
0x143a   :  { %v1908_v24 = vmul.f32 %v3409_v3, %v1906_v23 }
0x143c   :  { %v3931_v59 = vadd.f32 %v1908_v24, %v3889_v46  ;;  %2088 = vrot.lane.b32.xlu1 %v1908_v24, %s3468_s4 }
0x14aa   :  { %v2014_v25 = vpop.permute.xlu0 %2013 }
0x14ab   :  { %3030 = vmatmul.mubr.msk.f32.vlgmr.msra.gmra.mrb[14].mxu0 %vm154_vm3, %v2014_v25  ;;  %3052 = vmatmul.mubr.msk.f32.vlgmr.msra.gmra.mrb[16].mxu1 %vm154_vm3, %v2014_v25 }
0x14ac   :  { %3249 = vmatpush3.bf16.msra.mxu0 %v3667_v13  ;;  %3040 = vmatprep.mubr.msk.f32.mxu0 %vm3465_vm2, %v3466_v45 }
0x14ad   :  { %3250 = vmatprep.subr.bf16.mxu0 %v3464_v41  ;;  %3261 = vmatpush3.bf16.msra.mxu1 %v3648_v5 }
0x14ae   :  { %3262 = vmatprep.subr.bf16.mxu1 %v3464_v41  ;;  %3062 = vmatprep.mubr.msk.f32.mxu1 %vm3465_vm2, %v3466_v45  ;;  %v2089_v26 = vpop.permute.xlu1 %2088 }
0x14b0   :  { %3252 = vmatpush3.bf16.msra.mxu0 %v3678_v17 }
0x14b1   :  { %3264 = vmatpush3.bf16.msra.mxu1 %v3654_v7  ;;  %3271 = vmatprep.subr.bf16.mxu0 %v3464_v41 }
0x14b2   :  { %3265 = vmatprep.subr.bf16.mxu1 %v3464_v41 }
0x14b3   :  { %3041 = vmatmul.mubr.msk.f32.vlgmr.msra.gmra.mrb[14].mxu0 %vm154_vm3, %v2089_v26 }
0x14b4   :  { %3084 = vmatprep.mubr.msk.f32.mxu0 %vm3465_vm2, %v3466_v45 }
0x157e   :  { %v2254_v5 = vpop.f32.mrb[16].mxu1 }
0x157f   :  { %v2259_v27 = vrot.slane %v2254_v5, 2  ;;  %v3053_v28 = vpop.f32.mrb[17].mxu1  ;;  %v2615_v5 = vld [vmem:[%s4014_s9] ss:$0 sm:$0xff] }
0x1581   :  { %v2261_v29 = vadd.f32 %v2259_v27, %v3629_v50 }
0x1583   :  { %3414 = vtanh.f32 %v2261_v29  ;;  %v2611_v34 = vmul.f32 -1.442695, %v2261_v29 }
0x1586   :  { %v2158_v30 = vpop.f32.mrb[14].mxu0 }
0x1587   :  { %v3283_v31 = vadd.f32 %v3702_v22, %v2158_v30  ;;  %v3042_v7 = vpop.f32.mrb[15].mxu0 }
0x1589   :  { %3416 = vtanh.f32 %v3283_v31  ;;  %v2609_v35 = vmul.f32 -1.442695, %v3283_v31 }
0x158a   :  { %3418 = vpow2.f32 %v2611_v34 }
0x158b   :  { %3420 = vpow2.f32 %v2609_v35 }
0x158d   :  { %v3415_v32 = vpop.eup %3414 }
0x158e   :  { %2274 = vrot.lane.b32.xlu0 %v3415_v32, %s3467_s22 }
0x1593   :  { %v3417_v33 = vpop.eup %3416 }
0x1594   :  { %2172 = vrot.lane.b32.xlu1 %v3417_v33, %s3467_s22  ;;  %v3419_v36 = vpop.eup %3418 }
0x1595   :  { %v2265_v37 = vadd.f32 1.0, %v3419_v36  ;;  %v3421_v38 = vpop.eup %3420 }
0x1596   :  { %v2166_v50 = vadd.f32 1.0, %v3421_v38 }
0x1597   :  { %3422 = vrcp.f32 %v2265_v37 }
0x1598   :  { %3424 = vrcp.f32 %v2166_v50 }
0x15a1   :  { %v3423_v39 = vpop.eup %3422 }
0x15a2   :  { %v3425_v46 = vpop.eup %3424  ;;  %v2272_v51 = vmul.f32 %v3423_v39, %v2270_v49 }
0x15a3   :  { %v2170_v55 = vmul.f32 %v3425_v46, %v3924_v15  ;;  %v2468_v15 = vld [vmem:[%s4013_s8 + $0x8] sm:$0xff] }
0x1600   :  { %v2275_v42 = vpop.permute.xlu0 %2274 }
0x1601   :  { %v2277_v43 = vmul.f32 %v3423_v39, %v2275_v42 }
0x1603   :  { %2279 = vrot.lane.b32.xlu0 %v2277_v43, %s3468_s4 }
0x1606   :  { %v2173_v47 = vpop.permute.xlu1 %2172 }
0x1607   :  { %v2175_v48 = vmul.f32 %v3425_v46, %v2173_v47 }
0x1609   :  { %2177 = vrot.lane.b32.xlu1 %v2175_v48, %s3468_s4 }
0x1675   :  { %v2280_v53 = vpop.permute.xlu0 %2279 }
0x1676   :  { %v2282_v54 = vadd.f32 %v2280_v53, %v2272_v51 }
0x1678   :  { %3426 = vtanh.f32 %v2282_v54 }
0x167b   :  { %v2178_v56 = vpop.permute.xlu1 %2177 }
0x167c   :  { %v2180_v57 = vadd.f32 %v2178_v56, %v2170_v55 }
0x167e   :  { %3428 = vtanh.f32 %v2180_v57 }
0x1682   :  { %v3427_v40 = vpop.eup %3426 }
0x1683   :  { %2285 = vrot.lane.b32.xlu0 %v3427_v40, %s3467_s22 }
0x1688   :  { %v3429_v58 = vpop.eup %3428 }
0x1689   :  { %2183 = vrot.lane.b32.xlu1 %v3429_v58, %s3467_s22 }
0x16f5   :  { %v2286_v44 = vpop.permute.xlu0 %2285 }
0x16f6   :  { %v2288_v60 = vmul.f32 %v3423_v39, %v2286_v44 }
0x16f8   :  { %v2290_v52 = vrot.slane %v2288_v60, 6 }
0x16fa   :  { %2291 = vrot.lane.b32.xlu0 %v2290_v52, %s3468_s4 }
0x16fb   :  { %v2184_v61 = vpop.permute.xlu1 %2183 }
0x16fc   :  { %v2186_v62 = vmul.f32 %v3425_v46, %v2184_v61 }
0x16fe   :  { %v2187_v63 = vadd.f32 %v2186_v62, %v3931_v59  ;;  %2366 = vrot.lane.b32.xlu1 %v2186_v62, %s3468_s4 }
0x176c   :  { %v2292_v0 = vpop.permute.xlu0 %2291 }
0x176d   :  { %3063 = vmatmul.mubr.msk.f32.vlgmr.msra.gmra.mrb[18].mxu1 %vm154_vm3, %v2292_v0 }
0x176e   :  { %3267 = vmatpush3.bf16.msra.mxu1 %v3667_v13  ;;  %3073 = vmatprep.mubr.msk.f32.mxu1 %vm3465_vm2, %v3466_v45 }
0x176f   :  { %3268 = vmatprep.subr.bf16.mxu1 %v3464_v41 }
0x1770   :  { %v2367_v1 = vpop.permute.xlu1 %2366 }
0x1772   :  { %3270 = vmatpush3.bf16.msra.mxu1 %v3678_v17 }
0x1775   :  { %3074 = vmatmul.mubr.msk.f32.vlgmr.msra.gmra.mrb[18].mxu1 %vm154_vm3, %v2367_v1 }
0x1848   :  { %v2436_v2 = vpop.f32.mrb[18].mxu1 }
0x1849   :  { %v3284_v3 = vadd.f32 %v3702_v22, %v2436_v2  ;;  %v3075_v4 = vpop.f32.mrb[19].mxu1  ;;  %v2467_v22 = vld [vmem:[%s4013_s8] sm:$0xff]  ;;  %s3469_s8 = smov [#allocation2]  }
0x184a   :  { %v3272_v18 = vpack.c.bf16 %v2468_v15, %v2467_v22  ;;  %s2561_s2 = sshll.u32 %s3469_s8, 4  ;;  %s2562_s2 = int_to_ptr.vmem [resolvable:$true] %s2561_s2 }
0x184b   :  { %3430 = vtanh.f32 %v3284_v3  ;;  %v2614_v8 = vmul.f32 -1.442695, %v3284_v3  ;;  %p3443_p1 = scmp.lt.s32.totalorder %s2562_s2, %s2562_s2 }
0x184c   :  { %3273 = vmatpush3.bf16.msra.mxu0 %v3272_v18 }
0x184d   :  { %3432 = vpow2.f32 %v2614_v8  ;;  %3274 = vmatprep.subr.bf16.mxu0 %v3464_v41 }
0x1850   :  { %3276 = vmatpush3.bf16.msra.mxu0 %v3275_v20 }
0x1855   :  { %v3431_v6 = vpop.eup %3430 }
0x1856   :  { %2450 = vrot.lane.b32.xlu0 %v3431_v6, %s3467_s22 }
0x1857   :  { %v3433_v13 = vpop.eup %3432 }
0x1858   :  { %v2444_v9 = vadd.f32 1.0, %v3433_v13 }
0x185a   :  { %3434 = vrcp.f32 %v2444_v9 }
0x1864   :  { %v3435_v45 = vpop.eup %3434 }
0x1865   :  { %v2448_v17 = vmul.f32 %v3435_v45, %v2180_v57 }
0x18c8   :  { %v2451_v10 = vpop.permute.xlu0 %2450 }
0x18c9   :  { %v2453_v11 = vmul.f32 %v3435_v45, %v2451_v10 }
0x18cb   :  { %2455 = vrot.lane.b32.xlu1 %v2453_v11, %s3468_s4 }
0x193d   :  { %v2456_v12 = vpop.permute.xlu1 %2455 }
0x193e   :  { %v2458_v14 = vadd.f32 %v2456_v12, %v2448_v17 }
0x1940   :  { %3436 = vtanh.f32 %v2458_v14 }
0x194a   :  { %v3437_v21 = vpop.eup %3436 }
0x194b   :  { %2461 = vrot.lane.b32.xlu0 %v3437_v21, %s3467_s22  ;;  %s3438_s22 = scalar_lea.vmem %s2562_s2, 32 }
0x194c   :  { %p3439_p0 = scmp.ne.s32.totalorder %s2562_s2, %s3438_s22  ;;  %p3444_p2 = scmp.lt.s32.totalorder %s3438_s22, %s3438_s22 }
0x194e   :  { %p3445_p3 = por %p3444_p2, %p3443_p1 }
0x1950   :  { %p3446_p4 = pnand %p3445_p3, %p3439_p0 }
0x19bd   :  { %v2462_v23 = vpop.permute.xlu0 %2461 }
0x19be   :  { %v2464_v24 = vmul.f32 %v3435_v45, %v2462_v23 }
0x19c0   :  { %v2465_v59 = vadd.f32 %v2464_v24, %v2187_v63 }
0x19c2   :  { %v2466_v25 = vmul.f32 0.125, %v2465_v59 }
0x19c4   :  { %2479 = vrot.lane.b32.xlu1 %v2466_v25, %s3468_s4 }
0x1a36   :  { %v2480_v26 = vpop.permute.xlu1 %2479 }
0x1a37   :  { %3085 = vmatmul.mubr.msk.f32.vlgmr.msra.gmra.mrb[16].mxu0 %vm154_vm3, %v2480_v26 }
0x1b0a   :  { %v2549_v41 = vpop.f32.mrb[16].mxu0 }
0x1b0b   :  { %v2550_v27 = vadd.f32 %v2615_v5, %v2549_v41  ;;  %v3086_v28 = vpop.f32.mrb[17].mxu0 }
0x1b0d   :  { %2554 = vst.msk [vmem:[#allocation2] sm:$0x3] %vm2553_vm4, %v2550_v27 }
0x1b0e   :  { %3449 = shalt.err (!%p3446_p4)
}
0x1b0f   :  { %s3450_s26 = scalar_lea.hbm %s4015_s10, 32 }
0x1b10   :  { %p3451_p5 = scmp.ne.s32.totalorder %s4015_s10, %s3450_s26  ;;  %p3454_p6 = scmp.lt.u32.totalorder %s3450_s26, %s4015_s10 }
0x1b12   :  { %p3456_p7 = pnand %p3454_p6, %p3451_p5 }
0x1b14   :  { %3459 = shalt.err (!%p3456_p7)
}
0x1b15   :  { %2564 = dma.vmem_to_hbm [thread:$0]  %s2562_s2, 32, %s4015_s10, [#allocation3]  }
0x1b16   :  { %3460 = dma.done.wait [#allocation3], 32  }
0x1b17   :  { %3461 = vsyncadd [#allocation3], 4294967264 }
0x1b18   :  { %2568 = vsyncpa [#allocation3], 1 }

</bundles_post_ra>
